<compile_context>
chip_gen: v7x
topology: tpu7x:2x2x1
jax: 0.10.0
libtpu: 0.0.40
codegen_flags: <defaults>
</compile_context>

<pallas_src>
import functools
import math

import jax
import jax.numpy as jnp
from jax import lax
from jax.experimental import pallas as pl
from jax.experimental.pallas import tpu as pltpu


def _layernorm(x, gamma, beta, eps=1e-5):
    mean = jnp.mean(x, axis=-1, keepdims=True)
    var = jnp.mean((x - mean) ** 2, axis=-1, keepdims=True)
    return (x - mean) * lax.rsqrt(var + eps) * gamma + beta


def transformer_block_kernel(
    # ---- inputs (order matches in_specs) ----
    xq_ref,     # (1, TQ, E)  query tile of x, original dtype (residual / LayerNorm path)
    xf_ref,     # (1, S,  E)  full sequence, compute dtype (K/V source); same block for all qi
    wq_hbm,     # (E, E)      Wq^T  (1/sqrt(Dh) folded)           -- memory_space=pl.ANY
    wkv_hbm,    # (E, 2E)     [Wk; Wv]^T packed                   -- memory_space=pl.ANY
    wo_hbm,     # (E, E)      out_proj.weight^T                   -- memory_space=pl.ANY
    w1_hbm,     # (E, 3E)     feedforward[0].weight^T             -- memory_space=pl.ANY
    w2_hbm,     # (3E, E)     feedforward[2].weight^T             -- memory_space=pl.ANY
    bq_ref, bkv_ref, bo_ref, g1_ref, be1_ref, b1_ref, b2_ref, g2_ref, be2_ref,  # small params
    # ---- outputs ----
    o_ref,      # (1, TQ, E)
    # ---- scratch ----
    wq_v, wkv_v, wo_v, w1_v, w2_v,   # single-buffered VMEM weight copies
    kv_v,       # (S, 2E) compute dtype: K|V, computed once per batch element
    attn_v,     # (TQ, E) f32: per-head attention outputs written to static lane slices
    dma_sem,    # DMA semaphores, shape (5,)
    *,
    num_heads: int,
):
    f32 = jnp.float32
    qi = pl.program_id(1)
    xq = xq_ref[0]                       # (TQ, E), original dtype
    E = xq.shape[-1]
    Dh = E // num_heads
    cdt = wq_v.dtype                     # MXU operand dtype (bf16 or f32); accumulation is f32

    @pl.when(qi == 0)
    def _load_weights_and_project_kv():
        # Single-buffered weight load: HBM -> VMEM scratch once per batch element.  qi == 0
        # fires for every batch index, so this stays correct when the "parallel" batch axis is
        # split across TensorCores on v7x (each core loads into its own scratch).
        copies = [
            pltpu.make_async_copy(wkv_hbm, wkv_v, dma_sem.at[0]),
            pltpu.make_async_copy(wq_hbm, wq_v, dma_sem.at[1]),
            pltpu.make_async_copy(wo_hbm, wo_v, dma_sem.at[2]),
            pltpu.make_async_copy(w1_hbm, w1_v, dma_sem.at[3]),
            pltpu.make_async_copy(w2_hbm, w2_v, dma_sem.at[4]),
        ]
        for cp in copies:
            cp.start()
        copies[0].wait()                 # need Wkv first for the KV projection
        xf = xf_ref[0]                   # (S, E), already compute dtype (pre-cast host-side)
        kv = jnp.dot(xf, wkv_v[...], preferred_element_type=f32) + bkv_ref[0]   # (S, 2E) f32
        kv_v[...] = kv.astype(cdt)       # resident K/V, reused by every query tile of this batch
        for cp in copies[1:]:            # remaining weight DMAs overlapped with the KV matmul
            cp.wait()

    # Q projection for this query tile (1/sqrt(Dh) pre-folded into Wq/bq host-side).
    q = jnp.dot(xq.astype(cdt), wq_v[...], preferred_element_type=f32) + bq_ref[0]   # (TQ, E)
    q_c = q.astype(cdt)

    # Per-head attention.  Head outputs land in static lane slices of attn_v so the output
    # projection below is ONE (TQ,E)x(E,E) MXU matmul (contraction K=E) instead of H small
    # K=Dh matmuls plus H accumulator adds.
    # TODO(synk): if bundle dumps show vxpose pressure from the (1,1)-contraction below, store K
    #             transposed (E,S) once per batch element right after the KV projection.
    for h in range(num_heads):
        lo = h * Dh
        qh = q_c[:, lo:lo + Dh]                        # (TQ, Dh)
        kh = kv_v[:, lo:lo + Dh]                       # (S, Dh)
        vh = kv_v[:, E + lo:E + lo + Dh]               # (S, Dh)
        s = lax.dot_general(qh, kh, (((1,), (1,)), ((), ())),
                            preferred_element_type=f32)                     # (TQ, S)
        s = s - jnp.max(s, axis=-1, keepdims=True)
        p = jnp.exp(s)
        # Softmax divide -> EUP approx reciprocal + VPU multiply.
        p = p * pl.reciprocal(jnp.sum(p, axis=-1, keepdims=True), approx=True)
        attn_v[:, lo:lo + Dh] = jnp.dot(p.astype(cdt), vh, preferred_element_type=f32)

    attn = jnp.dot(attn_v[...].astype(cdt), wo_v[...],
                   preferred_element_type=f32) + bo_ref[0]                   # (TQ, E)

    # Residual + LayerNorm 1 (f32 elementwise, residual uses x at its original precision).
    y = _layernorm(xq.astype(f32) + attn, g1_ref[0], be1_ref[0])

    # Feedforward: Linear(E -> 3E) -> ReLU -> Linear(3E -> E).
    h1 = jnp.dot(y.astype(cdt), w1_v[...], preferred_element_type=f32) + b1_ref[0]
    h1 = jnp.maximum(h1, 0.0)
    ff = jnp.dot(h1.astype(cdt), w2_v[...], preferred_element_type=f32) + b2_ref[0]

    # Residual + LayerNorm 2.
    o_ref[0] = _layernorm(y + ff, g2_ref[0], be2_ref[0]).astype(o_ref.dtype)


def transformer_block(x, params, num_heads, *, seq_block=None, compute_dtype=None):
    """x: (B, S, E) batch-first. `params` in PyTorch layout (see init_params)."""
    B, S, E = x.shape
    assert E % num_heads == 0
    Dh = E // num_heads
    (wqkv, bqkv, wo, bo, g1, be1, w1, b1, w2, b2, g2, be2) = params
    if compute_dtype is None:
        compute_dtype = x.dtype
    f32 = jnp.float32
    scale = 1.0 / math.sqrt(Dh)

    # One-time host-side weight prep: pre-transpose, fold the attention scale, pack K/V, cast
    # the big matrices to the MXU compute dtype.  Biases / LN params stay f32.
    wq_t = (wqkv[:E].T * scale).astype(compute_dtype)            # (E, E)
    bq = (bqkv[:, :E] * scale).astype(f32)                       # (1, E)
    wkv_t = wqkv[E:].T.astype(compute_dtype)                     # (E, 2E)
    bkv = bqkv[:, E:].astype(f32)                                # (1, 2E)
    wo_t = wo.T.astype(compute_dtype)                            # (E, E)
    w1_t = w1.T.astype(compute_dtype)                            # (E, 3E)
    w2_t = w2.T.astype(compute_dtype)                            # (3E, E)
    small = (bq, bkv, bo.astype(f32), g1.astype(f32), be1.astype(f32),
             b1.astype(f32), b2.astype(f32), g2.astype(f32), be2.astype(f32))

    # K/V source stream pre-cast host-side (halves its HBM->VMEM bytes when bf16).
    xf = x.astype(compute_dtype)

    # seq_block: multiple of 8 for f32 I/O (16 for bf16 I/O); large (<=512) to keep the MXU fed.
    sub = 8 if x.dtype.itemsize >= 4 else 16
    if seq_block is None:
        seq_block = S
        for cand in (512, 256, 128, 64, 32, 16, 8):
            if S % cand == 0 and cand % sub == 0:
                seq_block = cand
                break
    assert S % seq_block == 0, "S must be divisible by seq_block"
    assert seq_block % sub == 0, "seq_block must be a multiple of 8 (f32 I/O) / 16 (bf16 I/O)"
    grid = (B, S // seq_block)

    # VMEM budget: ~80% of per-core capacity, capped at 100 MiB (v5e/v6e: 128 MiB physical,
    # v7x: 64 MiB).  The except only covers the hardware-capability query itself.
    try:
        vmem_cap = pltpu.get_tpu_info().vmem_capacity_bytes
    except Exception:
        vmem_cap = 64 * 1024 * 1024   # conservative fallback valid on every generation
    vmem_limit = min(int(vmem_cap * 0.8), 100 * 1024 * 1024)

    def const_spec(shape):
        nd = len(shape)
        return pl.BlockSpec(shape, lambda b, qi, _n=nd: (0,) * _n)

    in_specs = [
        pl.BlockSpec((1, seq_block, E), lambda b, qi: (b, qi, 0)),   # query tile (x dtype)
        pl.BlockSpec((1, S, E), lambda b, qi: (b, 0, 0)),            # K/V source: constant index
                                                                     # across qi -> one DMA per b
        pl.BlockSpec(memory_space=pl.ANY),   # Wq^T   (manual DMA -> single-buffered VMEM)
        pl.BlockSpec(memory_space=pl.ANY),   # Wkv^T
        pl.BlockSpec(memory_space=pl.ANY),   # Wo^T
        pl.BlockSpec(memory_space=pl.ANY),   # W1^T
        pl.BlockSpec(memory_space=pl.ANY),   # W2^T
    ] + [const_spec(p.shape) for p in small]
    out_specs = pl.BlockSpec((1, seq_block, E), lambda b, qi: (b, qi, 0))

    scratch_shapes = [
        pltpu.VMEM((E, E), compute_dtype),            # Wq^T
        pltpu.VMEM((E, 2 * E), compute_dtype),        # Wkv^T
        pltpu.VMEM((E, E), compute_dtype),            # Wo^T
        pltpu.VMEM((E, 3 * E), compute_dtype),        # W1^T
        pltpu.VMEM((3 * E, E), compute_dtype),        # W2^T
        pltpu.VMEM((S, 2 * E), compute_dtype),        # resident K/V per batch element
        pltpu.VMEM((seq_block, E), jnp.float32),      # per-head attention outputs
        pltpu.SemaphoreType.DMA((5,)),                # weight-copy semaphores
    ]

    fn = pl.pallas_call(
        functools.partial(transformer_block_kernel, num_heads=num_heads),
        out_shape=jax.ShapeDtypeStruct((B, S, E), x.dtype),
        grid=grid,
        in_specs=in_specs,
        out_specs=out_specs,
        scratch_shapes=scratch_shapes,
        compiler_params=pltpu.CompilerParams(
            # batch across TensorCores (v7x megacore); qi sequential so the K/V scratch is valid
            dimension_semantics=("parallel", "arbitrary"),
            vmem_limit_bytes=vmem_limit,
        ),
    )
    return fn(x, xf, wq_t, wkv_t, wo_t, w1_t, w2_t, *small)


def reference_transformer_block(x, params, num_heads):
    """Pure-JAX reference mirroring the PyTorch forward."""
    (wqkv, bqkv, wo, bo, g1, be1, w1, b1, w2, b2, g2, be2) = params
    B, S, E = x.shape
    Dh = E // num_heads
    q = x @ wqkv[:E].T + bqkv[0, :E]
    k = x @ wqkv[E:2 * E].T + bqkv[0, E:2 * E]
    v = x @ wqkv[2 * E:].T + bqkv[0, 2 * E:]
    qh = q.reshape(B, S, num_heads, Dh).transpose(0, 2, 1, 3)
    kh = k.reshape(B, S, num_heads, Dh).transpose(0, 2, 1, 3)
    vh = v.reshape(B, S, num_heads, Dh).transpose(0, 2, 1, 3)
    scores = jnp.einsum("bhqd,bhkd->bhqk", qh, kh) / math.sqrt(Dh)
    p = jax.nn.softmax(scores, axis=-1)
    o = jnp.einsum("bhqk,bhkd->bhqd", p, vh).transpose(0, 2, 1, 3).reshape(B, S, E)
    attn = o @ wo.T + bo[0]

    def ln(z, g, b):
        m = z.mean(-1, keepdims=True)
        var = ((z - m) ** 2).mean(-1, keepdims=True)
        return (z - m) * lax.rsqrt(var + 1e-5) * g[0] + b[0]

    y = ln(x + attn, g1, be1)
    ff = jnp.maximum(y @ w1.T + b1[0], 0.0) @ w2.T + b2[0]
    return ln(y + ff, g2, be2)


def init_params(key, embed_dim):
    ff_dim = embed_dim * 3
    ks = jax.random.split(key, 8)
    s_e = 1.0 / math.sqrt(embed_dim)
    s_f = 1.0 / math.sqrt(ff_dim)
    wqkv = jax.random.uniform(ks[0], (3 * embed_dim, embed_dim), jnp.float32, -s_e, s_e)
    bqkv = jnp.zeros((1, 3 * embed_dim), jnp.float32)
    wo = jax.random.uniform(ks[1], (embed_dim, embed_dim), jnp.float32, -s_e, s_e)
    bo = jnp.zeros((1, embed_dim), jnp.float32)
    g1 = jnp.ones((1, embed_dim), jnp.float32)
    be1 = jnp.zeros((1, embed_dim), jnp.float32)
    w1 = jax.random.uniform(ks[2], (ff_dim, embed_dim), jnp.float32, -s_e, s_e)
    b1 = jax.random.uniform(ks[3], (1, ff_dim), jnp.float32, -s_e, s_e)
    w2 = jax.random.uniform(ks[4], (embed_dim, ff_dim), jnp.float32, -s_f, s_f)
    b2 = jax.random.uniform(ks[5], (1, embed_dim), jnp.float32, -s_f, s_f)
    g2 = jnp.ones((1, embed_dim), jnp.float32)
    be2 = jnp.zeros((1, embed_dim), jnp.float32)
    return (wqkv, bqkv, wo, bo, g1, be1, w1, b1, w2, b2, g2, be2)


if __name__ == "__main__":
    B, S, E, H = 2, 16, 32, 4
    key = jax.random.PRNGKey(0)
    kx, kp = jax.random.split(key)
    x = jax.random.normal(kx, (B, S, E), jnp.float32)
    params = init_params(kp, E)

    ref = reference_transformer_block(x, params, num_heads=H)

    # f32 MXU operands; seq_block=8 exercises the (batch, seq-tile) grid = (2, 2), the
    # compute-KV-once / reuse-across-query-tiles path, and the per-batch weight load.
    out = jax.block_until_ready(transformer_block(x, params, num_heads=H, seq_block=8))
    assert out.shape == (B, S, E)
    assert jnp.allclose(out, ref, rtol=1e-2, atol=1e-2), "f32 kernel mismatch vs reference"

    # bf16 MXU operands with f32 accumulation (production mode: bf16 weights + bf16 K/V stream).
    out_bf16 = jax.block_until_ready(
        transformer_block(x, params, num_heads=H, seq_block=8, compute_dtype=jnp.bfloat16))
    assert jnp.allclose(out_bf16, ref, rtol=7e-2, atol=7e-2), "bf16 kernel mismatch vs reference"

    print("KERNEL_OK")
</pallas_src>

<mosaic_0001>
module attributes {stable_mosaic.version = 11 : i64} {
  func.func @transformer_block_kernel(%arg0: i32, %arg1: i32, %arg2: memref<1x8x32xf32, #tpu.memory_space<vmem>>, %arg3: memref<1x16x32xf32, #tpu.memory_space<vmem>>, %arg4: memref<32x32xf32, #tpu.memory_space<any>>, %arg5: memref<32x64xf32, #tpu.memory_space<any>>, %arg6: memref<32x32xf32, #tpu.memory_space<any>>, %arg7: memref<32x96xf32, #tpu.memory_space<any>>, %arg8: memref<96x32xf32, #tpu.memory_space<any>>, %arg9: memref<1x32xf32, #tpu.memory_space<vmem>>, %arg10: memref<1x64xf32, #tpu.memory_space<vmem>>, %arg11: memref<1x32xf32, #tpu.memory_space<vmem>>, %arg12: memref<1x32xf32, #tpu.memory_space<vmem>>, %arg13: memref<1x32xf32, #tpu.memory_space<vmem>>, %arg14: memref<1x96xf32, #tpu.memory_space<vmem>>, %arg15: memref<1x32xf32, #tpu.memory_space<vmem>>, %arg16: memref<1x32xf32, #tpu.memory_space<vmem>>, %arg17: memref<1x32xf32, #tpu.memory_space<vmem>>, %arg18: memref<1x8x32xf32, #tpu.memory_space<vmem>>, %arg19: memref<32x32xf32, #tpu.memory_space<vmem>>, %arg20: memref<32x64xf32, #tpu.memory_space<vmem>>, %arg21: memref<32x32xf32, #tpu.memory_space<vmem>>, %arg22: memref<32x96xf32, #tpu.memory_space<vmem>>, %arg23: memref<96x32xf32, #tpu.memory_space<vmem>>, %arg24: memref<16x64xf32, #tpu.memory_space<vmem>>, %arg25: memref<8x32xf32, #tpu.memory_space<vmem>>, %arg26: memref<5x!tpu.dma_semaphore, #tpu.memory_space<semaphore_mem>>) attributes {dimension_semantics = [#tpu.dimension_semantics<parallel>, #tpu.dimension_semantics<arbitrary>], iteration_bounds = array<i64: 2, 2>, scalar_prefetch = 0 : i64, scratch_operands = 8 : i64, tpu.core_type = #tpu.core_type<tc>, window_params = [{transform_indices = @transform_0, window_bounds = array<i64: 1, 8, 32>}, {transform_indices = @transform_1, window_bounds = array<i64: 1, 16, 32>}, {}, {}, {}, {}, {}, {pipeline_mode = #tpu.pipeline_mode<synchronous>, transform_indices = @transform_7, window_bounds = array<i64: 1, 32>}, {pipeline_mode = #tpu.pipeline_mode<synchronous>, transform_indices = @transform_8, window_bounds = array<i64: 1, 64>}, {pipeline_mode = #tpu.pipeline_mode<synchronous>, transform_indices = @transform_9, window_bounds = array<i64: 1, 32>}, {pipeline_mode = #tpu.pipeline_mode<synchronous>, transform_indices = @transform_10, window_bounds = array<i64: 1, 32>}, {pipeline_mode = #tpu.pipeline_mode<synchronous>, transform_indices = @transform_11, window_bounds = array<i64: 1, 32>}, {pipeline_mode = #tpu.pipeline_mode<synchronous>, transform_indices = @transform_12, window_bounds = array<i64: 1, 96>}, {pipeline_mode = #tpu.pipeline_mode<synchronous>, transform_indices = @transform_13, window_bounds = array<i64: 1, 32>}, {pipeline_mode = #tpu.pipeline_mode<synchronous>, transform_indices = @transform_14, window_bounds = array<i64: 1, 32>}, {pipeline_mode = #tpu.pipeline_mode<synchronous>, transform_indices = @transform_15, window_bounds = array<i64: 1, 32>}, {transform_indices = @transform_16, window_bounds = array<i64: 1, 8, 32>}]} {
    %c0 = arith.constant 0 : index
    %c0_0 = arith.constant 0 : index
    %c0_1 = arith.constant 0 : index
    %0 = vector.load %arg2[%c0, %c0_0, %c0_1] : memref<1x8x32xf32, #tpu.memory_space<vmem>>, vector<1x8x32xf32>
    %1 = vector.shape_cast %0 : vector<1x8x32xf32> to vector<8x32xf32>
    %c0_i32 = arith.constant 0 : i32
    %2 = arith.cmpi eq, %arg1, %c0_i32 : i32
    %3 = arith.extui %2 : i1 to i32
    %c0_i32_2 = arith.constant 0 : i32
    %4 = arith.cmpi ne, %3, %c0_i32_2 : i32
    scf.if %4 {
      %c0_i32_79 = arith.constant 0 : i32
      %161 = tpu.memref_slice %arg26[%c0_i32_79] : memref<5x!tpu.dma_semaphore, #tpu.memory_space<semaphore_mem>> -> memref<1x!tpu.dma_semaphore, #tpu.memory_space<semaphore_mem>>
      %162 = tpu.memref_squeeze %161 : memref<1x!tpu.dma_semaphore, #tpu.memory_space<semaphore_mem>> -> memref<!tpu.dma_semaphore, #tpu.memory_space<semaphore_mem>>
      tpu.enqueue_dma source(%arg5 : memref<32x64xf32, #tpu.memory_space<any>>) target(%arg20 : memref<32x64xf32, #tpu.memory_space<vmem>>) target_semaphore(%162 : memref<!tpu.dma_semaphore, #tpu.memory_space<semaphore_mem>>)
      %c1_i32 = arith.constant 1 : i32
      %163 = tpu.memref_slice %arg26[%c1_i32] : memref<5x!tpu.dma_semaphore, #tpu.memory_space<semaphore_mem>> -> memref<1x!tpu.dma_semaphore, #tpu.memory_space<semaphore_mem>>
      %164 = tpu.memref_squeeze %163 : memref<1x!tpu.dma_semaphore, #tpu.memory_space<semaphore_mem>> -> memref<!tpu.dma_semaphore, #tpu.memory_space<semaphore_mem>>
      tpu.enqueue_dma source(%arg4 : memref<32x32xf32, #tpu.memory_space<any>>) target(%arg19 : memref<32x32xf32, #tpu.memory_space<vmem>>) target_semaphore(%164 : memref<!tpu.dma_semaphore, #tpu.memory_space<semaphore_mem>>)
      %c2_i32 = arith.constant 2 : i32
      %165 = tpu.memref_slice %arg26[%c2_i32] : memref<5x!tpu.dma_semaphore, #tpu.memory_space<semaphore_mem>> -> memref<1x!tpu.dma_semaphore, #tpu.memory_space<semaphore_mem>>
      %166 = tpu.memref_squeeze %165 : memref<1x!tpu.dma_semaphore, #tpu.memory_space<semaphore_mem>> -> memref<!tpu.dma_semaphore, #tpu.memory_space<semaphore_mem>>
      tpu.enqueue_dma source(%arg6 : memref<32x32xf32, #tpu.memory_space<any>>) target(%arg21 : memref<32x32xf32, #tpu.memory_space<vmem>>) target_semaphore(%166 : memref<!tpu.dma_semaphore, #tpu.memory_space<semaphore_mem>>)
      %c3_i32 = arith.constant 3 : i32
      %167 = tpu.memref_slice %arg26[%c3_i32] : memref<5x!tpu.dma_semaphore, #tpu.memory_space<semaphore_mem>> -> memref<1x!tpu.dma_semaphore, #tpu.memory_space<semaphore_mem>>
      %168 = tpu.memref_squeeze %167 : memref<1x!tpu.dma_semaphore, #tpu.memory_space<semaphore_mem>> -> memref<!tpu.dma_semaphore, #tpu.memory_space<semaphore_mem>>
      tpu.enqueue_dma source(%arg7 : memref<32x96xf32, #tpu.memory_space<any>>) target(%arg22 : memref<32x96xf32, #tpu.memory_space<vmem>>) target_semaphore(%168 : memref<!tpu.dma_semaphore, #tpu.memory_space<semaphore_mem>>)
      %c4_i32 = arith.constant 4 : i32
      %169 = tpu.memref_slice %arg26[%c4_i32] : memref<5x!tpu.dma_semaphore, #tpu.memory_space<semaphore_mem>> -> memref<1x!tpu.dma_semaphore, #tpu.memory_space<semaphore_mem>>
      %170 = tpu.memref_squeeze %169 : memref<1x!tpu.dma_semaphore, #tpu.memory_space<semaphore_mem>> -> memref<!tpu.dma_semaphore, #tpu.memory_space<semaphore_mem>>
      tpu.enqueue_dma source(%arg8 : memref<96x32xf32, #tpu.memory_space<any>>) target(%arg23 : memref<96x32xf32, #tpu.memory_space<vmem>>) target_semaphore(%170 : memref<!tpu.dma_semaphore, #tpu.memory_space<semaphore_mem>>)
      %c0_i32_80 = arith.constant 0 : i32
      %171 = tpu.memref_slice %arg26[%c0_i32_80] : memref<5x!tpu.dma_semaphore, #tpu.memory_space<semaphore_mem>> -> memref<1x!tpu.dma_semaphore, #tpu.memory_space<semaphore_mem>>
      %172 = tpu.memref_squeeze %171 : memref<1x!tpu.dma_semaphore, #tpu.memory_space<semaphore_mem>> -> memref<!tpu.dma_semaphore, #tpu.memory_space<semaphore_mem>>
      tpu.wait_dma2 semaphore(%172 : memref<!tpu.dma_semaphore, #tpu.memory_space<semaphore_mem>>) src(%arg5 : memref<32x64xf32, #tpu.memory_space<any>>) dst(%arg20 : memref<32x64xf32, #tpu.memory_space<vmem>>)
      %c0_81 = arith.constant 0 : index
      %c0_82 = arith.constant 0 : index
      %c0_83 = arith.constant 0 : index
      %173 = vector.load %arg3[%c0_81, %c0_82, %c0_83] : memref<1x16x32xf32, #tpu.memory_space<vmem>>, vector<1x16x32xf32>
      %174 = vector.shape_cast %173 : vector<1x16x32xf32> to vector<16x32xf32>
      %c0_84 = arith.constant 0 : index
      %c0_85 = arith.constant 0 : index
      %175 = vector.load %arg20[%c0_84, %c0_85] : memref<32x64xf32, #tpu.memory_space<vmem>>, vector<32x64xf32>
      %cst_86 = arith.constant dense<0.000000e+00> : vector<16x64xf32>
      %176 = tpu.matmul %174, %175, %cst_86 {dimension_numbers = #tpu.dot_dimension_numbers<[1], [0], [0], [1], [0, 0, 1, 1], [], []>} : vector<16x32xf32>, vector<32x64xf32>, vector<16x64xf32> -> vector<16x64xf32>
      %c0_87 = arith.constant 0 : index
      %c0_88 = arith.constant 0 : index
      %177 = vector.load %arg10[%c0_87, %c0_88] : memref<1x64xf32, #tpu.memory_space<vmem>>, vector<1x64xf32>
      %178 = vector.shape_cast %177 : vector<1x64xf32> to vector<64xf32>
      %179 = vector.shape_cast %178 : vector<64xf32> to vector<1x64xf32>
      %180 = vector.broadcast %179 : vector<1x64xf32> to vector<16x64xf32>
      %181 = arith.addf %176, %180 : vector<16x64xf32>
      %c0_89 = arith.constant 0 : index
      %c0_90 = arith.constant 0 : index
      %182 = vector.load %arg24[%c0_89, %c0_90] : memref<16x64xf32, #tpu.memory_space<vmem>>, vector<16x64xf32>
      tpu.vector_store %arg24[%c0_89, %c0_90], %181 {strides = array<i32>} : memref<16x64xf32, #tpu.memory_space<vmem>>, vector<16x64xf32>,
      %c1_i32_91 = arith.constant 1 : i32
      %183 = tpu.memref_slice %arg26[%c1_i32_91] : memref<5x!tpu.dma_semaphore, #tpu.memory_space<semaphore_mem>> -> memref<1x!tpu.dma_semaphore, #tpu.memory_space<semaphore_mem>>
      %184 = tpu.memref_squeeze %183 : memref<1x!tpu.dma_semaphore, #tpu.memory_space<semaphore_mem>> -> memref<!tpu.dma_semaphore, #tpu.memory_space<semaphore_mem>>
      tpu.wait_dma2 semaphore(%184 : memref<!tpu.dma_semaphore, #tpu.memory_space<semaphore_mem>>) src(%arg4 : memref<32x32xf32, #tpu.memory_space<any>>) dst(%arg19 : memref<32x32xf32, #tpu.memory_space<vmem>>)
      %c2_i32_92 = arith.constant 2 : i32
      %185 = tpu.memref_slice %arg26[%c2_i32_92] : memref<5x!tpu.dma_semaphore, #tpu.memory_space<semaphore_mem>> -> memref<1x!tpu.dma_semaphore, #tpu.memory_space<semaphore_mem>>
      %186 = tpu.memref_squeeze %185 : memref<1x!tpu.dma_semaphore, #tpu.memory_space<semaphore_mem>> -> memref<!tpu.dma_semaphore, #tpu.memory_space<semaphore_mem>>
      tpu.wait_dma2 semaphore(%186 : memref<!tpu.dma_semaphore, #tpu.memory_space<semaphore_mem>>) src(%arg6 : memref<32x32xf32, #tpu.memory_space<any>>) dst(%arg21 : memref<32x32xf32, #tpu.memory_space<vmem>>)
      %c3_i32_93 = arith.constant 3 : i32
      %187 = tpu.memref_slice %arg26[%c3_i32_93] : memref<5x!tpu.dma_semaphore, #tpu.memory_space<semaphore_mem>> -> memref<1x!tpu.dma_semaphore, #tpu.memory_space<semaphore_mem>>
      %188 = tpu.memref_squeeze %187 : memref<1x!tpu.dma_semaphore, #tpu.memory_space<semaphore_mem>> -> memref<!tpu.dma_semaphore, #tpu.memory_space<semaphore_mem>>
      tpu.wait_dma2 semaphore(%188 : memref<!tpu.dma_semaphore, #tpu.memory_space<semaphore_mem>>) src(%arg7 : memref<32x96xf32, #tpu.memory_space<any>>) dst(%arg22 : memref<32x96xf32, #tpu.memory_space<vmem>>)
      %c4_i32_94 = arith.constant 4 : i32
      %189 = tpu.memref_slice %arg26[%c4_i32_94] : memref<5x!tpu.dma_semaphore, #tpu.memory_space<semaphore_mem>> -> memref<1x!tpu.dma_semaphore, #tpu.memory_space<semaphore_mem>>
      %190 = tpu.memref_squeeze %189 : memref<1x!tpu.dma_semaphore, #tpu.memory_space<semaphore_mem>> -> memref<!tpu.dma_semaphore, #tpu.memory_space<semaphore_mem>>
      tpu.wait_dma2 semaphore(%190 : memref<!tpu.dma_semaphore, #tpu.memory_space<semaphore_mem>>) src(%arg8 : memref<96x32xf32, #tpu.memory_space<any>>) dst(%arg23 : memref<96x32xf32, #tpu.memory_space<vmem>>)
    } else {
    }
    %c0_3 = arith.constant 0 : index
    %c0_4 = arith.constant 0 : index
    %5 = vector.load %arg19[%c0_3, %c0_4] : memref<32x32xf32, #tpu.memory_space<vmem>>, vector<32x32xf32>
    %cst = arith.constant dense<0.000000e+00> : vector<8x32xf32>
    %6 = tpu.matmul %1, %5, %cst {dimension_numbers = #tpu.dot_dimension_numbers<[1], [0], [0], [1], [0, 0, 1, 1], [], []>} : vector<8x32xf32>, vector<32x32xf32>, vector<8x32xf32> -> vector<8x32xf32>
    %c0_5 = arith.constant 0 : index
    %c0_6 = arith.constant 0 : index
    %7 = vector.load %arg9[%c0_5, %c0_6] : memref<1x32xf32, #tpu.memory_space<vmem>>, vector<1x32xf32>
    %8 = vector.shape_cast %7 : vector<1x32xf32> to vector<32xf32>
    %9 = vector.shape_cast %8 : vector<32xf32> to vector<1x32xf32>
    %10 = vector.broadcast %9 : vector<1x32xf32> to vector<8x32xf32>
    %11 = arith.addf %6, %10 : vector<8x32xf32>
    %12 = vector.extract_strided_slice %11 {offsets = [0, 0], sizes = [8, 8], strides = [1, 1]} : vector<8x32xf32> to vector<8x8xf32>
    %c0_7 = arith.constant 0 : index
    %c0_8 = arith.constant 0 : index
    %13 = vector.load %arg24[%c0_7, %c0_8] : memref<16x64xf32, #tpu.memory_space<vmem>>, vector<16x8xf32>
    %c0_9 = arith.constant 0 : index
    %c32 = arith.constant 32 : index
    %14 = vector.load %arg24[%c0_9, %c32] : memref<16x64xf32, #tpu.memory_space<vmem>>, vector<16x8xf32>
    %cst_10 = arith.constant dense<0.000000e+00> : vector<8x16xf32>
    %15 = tpu.matmul %12, %13, %cst_10 {dimension_numbers = #tpu.dot_dimension_numbers<[1], [1], [0], [0], [0, 0, 1, 0], [], []>} : vector<8x8xf32>, vector<16x8xf32>, vector<8x16xf32> -> vector<8x16xf32>
    %cst_11 = arith.constant dense<0xFF800000> : vector<8xf32>
    %16 = vector.multi_reduction <maximumf>, %15, %cst_11 [1] : vector<8x16xf32> to vector<8xf32>
    %17 = vector.shape_cast %16 : vector<8xf32> to vector<8x1xf32>
    %18 = vector.broadcast %17 : vector<8x1xf32> to vector<8x16xf32>
    %19 = arith.subf %15, %18 : vector<8x16xf32>
    %20 = math.exp %19 : vector<8x16xf32>
    %cst_12 = arith.constant dense<0.000000e+00> : vector<8xf32>
    %21 = vector.multi_reduction <add>, %20, %cst_12 [1] : vector<8x16xf32> to vector<8xf32>
    %22 = vector.shape_cast %21 : vector<8xf32> to vector<8x1xf32>
    %23 = tpu.reciprocal %22 {approx = true} : vector<8x1xf32> -> vector<8x1xf32>
    %24 = vector.broadcast %23 : vector<8x1xf32> to vector<8x16xf32>
    %25 = arith.mulf %20, %24 : vector<8x16xf32>
    %cst_13 = arith.constant dense<0.000000e+00> : vector<8x8xf32>
    %26 = tpu.matmul %25, %14, %cst_13 {dimension_numbers = #tpu.dot_dimension_numbers<[1], [0], [0], [1], [0, 0, 1, 1], [], []>} : vector<8x16xf32>, vector<16x8xf32>, vector<8x8xf32> -> vector<8x8xf32>
    %c0_14 = arith.constant 0 : index
    %c0_15 = arith.constant 0 : index
    %27 = vector.load %arg25[%c0_14, %c0_15] : memref<8x32xf32, #tpu.memory_space<vmem>>, vector<8x8xf32>
    tpu.vector_store %arg25[%c0_14, %c0_15], %26 {strides = array<i32>} : memref<8x32xf32, #tpu.memory_space<vmem>>, vector<8x8xf32>,
    %28 = vector.extract_strided_slice %11 {offsets = [0, 8], sizes = [8, 8], strides = [1, 1]} : vector<8x32xf32> to vector<8x8xf32>
    %c0_16 = arith.constant 0 : index
    %c8 = arith.constant 8 : index
    %29 = vector.load %arg24[%c0_16, %c8] : memref<16x64xf32, #tpu.memory_space<vmem>>, vector<16x8xf32>
    %c0_17 = arith.constant 0 : index
    %c40 = arith.constant 40 : index
    %30 = vector.load %arg24[%c0_17, %c40] : memref<16x64xf32, #tpu.memory_space<vmem>>, vector<16x8xf32>
    %cst_18 = arith.constant dense<0.000000e+00> : vector<8x16xf32>
    %31 = tpu.matmul %28, %29, %cst_18 {dimension_numbers = #tpu.dot_dimension_numbers<[1], [1], [0], [0], [0, 0, 1, 0], [], []>} : vector<8x8xf32>, vector<16x8xf32>, vector<8x16xf32> -> vector<8x16xf32>
    %cst_19 = arith.constant dense<0xFF800000> : vector<8xf32>
    %32 = vector.multi_reduction <maximumf>, %31, %cst_19 [1] : vector<8x16xf32> to vector<8xf32>
    %33 = vector.shape_cast %32 : vector<8xf32> to vector<8x1xf32>
    %34 = vector.broadcast %33 : vector<8x1xf32> to vector<8x16xf32>
    %35 = arith.subf %31, %34 : vector<8x16xf32>
    %36 = math.exp %35 : vector<8x16xf32>
    %cst_20 = arith.constant dense<0.000000e+00> : vector<8xf32>
    %37 = vector.multi_reduction <add>, %36, %cst_20 [1] : vector<8x16xf32> to vector<8xf32>
    %38 = vector.shape_cast %37 : vector<8xf32> to vector<8x1xf32>
    %39 = tpu.reciprocal %38 {approx = true} : vector<8x1xf32> -> vector<8x1xf32>
    %40 = vector.broadcast %39 : vector<8x1xf32> to vector<8x16xf32>
    %41 = arith.mulf %36, %40 : vector<8x16xf32>
    %cst_21 = arith.constant dense<0.000000e+00> : vector<8x8xf32>
    %42 = tpu.matmul %41, %30, %cst_21 {dimension_numbers = #tpu.dot_dimension_numbers<[1], [0], [0], [1], [0, 0, 1, 1], [], []>} : vector<8x16xf32>, vector<16x8xf32>, vector<8x8xf32> -> vector<8x8xf32>
    %c0_22 = arith.constant 0 : index
    %c8_23 = arith.constant 8 : index
    %43 = vector.load %arg25[%c0_22, %c8_23] : memref<8x32xf32, #tpu.memory_space<vmem>>, vector<8x8xf32>
    tpu.vector_store %arg25[%c0_22, %c8_23], %42 {strides = array<i32>} : memref<8x32xf32, #tpu.memory_space<vmem>>, vector<8x8xf32>,
    %44 = vector.extract_strided_slice %11 {offsets = [0, 16], sizes = [8, 8], strides = [1, 1]} : vector<8x32xf32> to vector<8x8xf32>
    %c0_24 = arith.constant 0 : index
    %c16 = arith.constant 16 : index
    %45 = vector.load %arg24[%c0_24, %c16] : memref<16x64xf32, #tpu.memory_space<vmem>>, vector<16x8xf32>
    %c0_25 = arith.constant 0 : index
    %c48 = arith.constant 48 : index
    %46 = vector.load %arg24[%c0_25, %c48] : memref<16x64xf32, #tpu.memory_space<vmem>>, vector<16x8xf32>
    %cst_26 = arith.constant dense<0.000000e+00> : vector<8x16xf32>
    %47 = tpu.matmul %44, %45, %cst_26 {dimension_numbers = #tpu.dot_dimension_numbers<[1], [1], [0], [0], [0, 0, 1, 0], [], []>} : vector<8x8xf32>, vector<16x8xf32>, vector<8x16xf32> -> vector<8x16xf32>
    %cst_27 = arith.constant dense<0xFF800000> : vector<8xf32>
    %48 = vector.multi_reduction <maximumf>, %47, %cst_27 [1] : vector<8x16xf32> to vector<8xf32>
    %49 = vector.shape_cast %48 : vector<8xf32> to vector<8x1xf32>
    %50 = vector.broadcast %49 : vector<8x1xf32> to vector<8x16xf32>
    %51 = arith.subf %47, %50 : vector<8x16xf32>
    %52 = math.exp %51 : vector<8x16xf32>
    %cst_28 = arith.constant dense<0.000000e+00> : vector<8xf32>
    %53 = vector.multi_reduction <add>, %52, %cst_28 [1] : vector<8x16xf32> to vector<8xf32>
    %54 = vector.shape_cast %53 : vector<8xf32> to vector<8x1xf32>
    %55 = tpu.reciprocal %54 {approx = true} : vector<8x1xf32> -> vector<8x1xf32>
    %56 = vector.broadcast %55 : vector<8x1xf32> to vector<8x16xf32>
    %57 = arith.mulf %52, %56 : vector<8x16xf32>
    %cst_29 = arith.constant dense<0.000000e+00> : vector<8x8xf32>
    %58 = tpu.matmul %57, %46, %cst_29 {dimension_numbers = #tpu.dot_dimension_numbers<[1], [0], [0], [1], [0, 0, 1, 1], [], []>} : vector<8x16xf32>, vector<16x8xf32>, vector<8x8xf32> -> vector<8x8xf32>
    %c0_30 = arith.constant 0 : index
    %c16_31 = arith.constant 16 : index
    %59 = vector.load %arg25[%c0_30, %c16_31] : memref<8x32xf32, #tpu.memory_space<vmem>>, vector<8x8xf32>
    tpu.vector_store %arg25[%c0_30, %c16_31], %58 {strides = array<i32>} : memref<8x32xf32, #tpu.memory_space<vmem>>, vector<8x8xf32>,
    %60 = vector.extract_strided_slice %11 {offsets = [0, 24], sizes = [8, 8], strides = [1, 1]} : vector<8x32xf32> to vector<8x8xf32>
    %c0_32 = arith.constant 0 : index
    %c24 = arith.constant 24 : index
    %61 = vector.load %arg24[%c0_32, %c24] : memref<16x64xf32, #tpu.memory_space<vmem>>, vector<16x8xf32>
    %c0_33 = arith.constant 0 : index
    %c56 = arith.constant 56 : index
    %62 = vector.load %arg24[%c0_33, %c56] : memref<16x64xf32, #tpu.memory_space<vmem>>, vector<16x8xf32>
    %cst_34 = arith.constant dense<0.000000e+00> : vector<8x16xf32>
    %63 = tpu.matmul %60, %61, %cst_34 {dimension_numbers = #tpu.dot_dimension_numbers<[1], [1], [0], [0], [0, 0, 1, 0], [], []>} : vector<8x8xf32>, vector<16x8xf32>, vector<8x16xf32> -> vector<8x16xf32>
    %cst_35 = arith.constant dense<0xFF800000> : vector<8xf32>
    %64 = vector.multi_reduction <maximumf>, %63, %cst_35 [1] : vector<8x16xf32> to vector<8xf32>
    %65 = vector.shape_cast %64 : vector<8xf32> to vector<8x1xf32>
    %66 = vector.broadcast %65 : vector<8x1xf32> to vector<8x16xf32>
    %67 = arith.subf %63, %66 : vector<8x16xf32>
    %68 = math.exp %67 : vector<8x16xf32>
    %cst_36 = arith.constant dense<0.000000e+00> : vector<8xf32>
    %69 = vector.multi_reduction <add>, %68, %cst_36 [1] : vector<8x16xf32> to vector<8xf32>
    %70 = vector.shape_cast %69 : vector<8xf32> to vector<8x1xf32>
    %71 = tpu.reciprocal %70 {approx = true} : vector<8x1xf32> -> vector<8x1xf32>
    %72 = vector.broadcast %71 : vector<8x1xf32> to vector<8x16xf32>
    %73 = arith.mulf %68, %72 : vector<8x16xf32>
    %cst_37 = arith.constant dense<0.000000e+00> : vector<8x8xf32>
    %74 = tpu.matmul %73, %62, %cst_37 {dimension_numbers = #tpu.dot_dimension_numbers<[1], [0], [0], [1], [0, 0, 1, 1], [], []>} : vector<8x16xf32>, vector<16x8xf32>, vector<8x8xf32> -> vector<8x8xf32>
    %c0_38 = arith.constant 0 : index
    %c24_39 = arith.constant 24 : index
    %75 = vector.load %arg25[%c0_38, %c24_39] : memref<8x32xf32, #tpu.memory_space<vmem>>, vector<8x8xf32>
    tpu.vector_store %arg25[%c0_38, %c24_39], %74 {strides = array<i32>} : memref<8x32xf32, #tpu.memory_space<vmem>>, vector<8x8xf32>,
    %c0_40 = arith.constant 0 : index
    %c0_41 = arith.constant 0 : index
    %76 = vector.load %arg25[%c0_40, %c0_41] : memref<8x32xf32, #tpu.memory_space<vmem>>, vector<8x32xf32>
    %c0_42 = arith.constant 0 : index
    %c0_43 = arith.constant 0 : index
    %77 = vector.load %arg21[%c0_42, %c0_43] : memref<32x32xf32, #tpu.memory_space<vmem>>, vector<32x32xf32>
    %cst_44 = arith.constant dense<0.000000e+00> : vector<8x32xf32>
    %78 = tpu.matmul %76, %77, %cst_44 {dimension_numbers = #tpu.dot_dimension_numbers<[1], [0], [0], [1], [0, 0, 1, 1], [], []>} : vector<8x32xf32>, vector<32x32xf32>, vector<8x32xf32> -> vector<8x32xf32>
    %c0_45 = arith.constant 0 : index
    %c0_46 = arith.constant 0 : index
    %79 = vector.load %arg11[%c0_45, %c0_46] : memref<1x32xf32, #tpu.memory_space<vmem>>, vector<1x32xf32>
    %80 = vector.shape_cast %79 : vector<1x32xf32> to vector<32xf32>
    %81 = vector.shape_cast %80 : vector<32xf32> to vector<1x32xf32>
    %82 = vector.broadcast %81 : vector<1x32xf32> to vector<8x32xf32>
    %83 = arith.addf %78, %82 : vector<8x32xf32>
    %84 = arith.addf %1, %83 : vector<8x32xf32>
    %c0_47 = arith.constant 0 : index
    %c0_48 = arith.constant 0 : index
    %85 = vector.load %arg12[%c0_47, %c0_48] : memref<1x32xf32, #tpu.memory_space<vmem>>, vector<1x32xf32>
    %86 = vector.shape_cast %85 : vector<1x32xf32> to vector<32xf32>
    %c0_49 = arith.constant 0 : index
    %c0_50 = arith.constant 0 : index
    %87 = vector.load %arg13[%c0_49, %c0_50] : memref<1x32xf32, #tpu.memory_space<vmem>>, vector<1x32xf32>
    %88 = vector.shape_cast %87 : vector<1x32xf32> to vector<32xf32>
    %cst_51 = arith.constant dense<0.000000e+00> : vector<8xf32>
    %89 = vector.multi_reduction <add>, %84, %cst_51 [1] : vector<8x32xf32> to vector<8xf32>
    %90 = vector.shape_cast %89 : vector<8xf32> to vector<8x1xf32>
    %cst_52 = arith.constant 3.200000e+01 : f32
    %91 = vector.broadcast %cst_52 : f32 to vector<8x1xf32>
    %92 = arith.divf %90, %91 : vector<8x1xf32>
    %93 = vector.broadcast %92 : vector<8x1xf32> to vector<8x32xf32>
    %94 = arith.subf %84, %93 : vector<8x32xf32>
    %95 = arith.mulf %94, %94 : vector<8x32xf32>
    %cst_53 = arith.constant dense<0.000000e+00> : vector<8xf32>
    %96 = vector.multi_reduction <add>, %95, %cst_53 [1] : vector<8x32xf32> to vector<8xf32>
    %97 = vector.shape_cast %96 : vector<8xf32> to vector<8x1xf32>
    %cst_54 = arith.constant 3.200000e+01 : f32
    %98 = vector.broadcast %cst_54 : f32 to vector<8x1xf32>
    %99 = arith.divf %97, %98 : vector<8x1xf32>
    %100 = vector.broadcast %92 : vector<8x1xf32> to vector<8x32xf32>
    %101 = arith.subf %84, %100 : vector<8x32xf32>
    %cst_55 = arith.constant 9.99999974E-6 : f32
    %102 = vector.broadcast %cst_55 : f32 to vector<8x1xf32>
    %103 = arith.addf %99, %102 : vector<8x1xf32>
    %104 = math.rsqrt %103 : vector<8x1xf32>
    %105 = vector.broadcast %104 : vector<8x1xf32> to vector<8x32xf32>
    %106 = arith.mulf %101, %105 : vector<8x32xf32>
    %107 = vector.shape_cast %86 : vector<32xf32> to vector<1x32xf32>
    %108 = vector.broadcast %107 : vector<1x32xf32> to vector<8x32xf32>
    %109 = arith.mulf %106, %108 : vector<8x32xf32>
    %110 = vector.shape_cast %88 : vector<32xf32> to vector<1x32xf32>
    %111 = vector.broadcast %110 : vector<1x32xf32> to vector<8x32xf32>
    %112 = arith.addf %109, %111 : vector<8x32xf32>
    %c0_56 = arith.constant 0 : index
    %c0_57 = arith.constant 0 : index
    %113 = vector.load %arg22[%c0_56, %c0_57] : memref<32x96xf32, #tpu.memory_space<vmem>>, vector<32x96xf32>
    %cst_58 = arith.constant dense<0.000000e+00> : vector<8x96xf32>
    %114 = tpu.matmul %112, %113, %cst_58 {dimension_numbers = #tpu.dot_dimension_numbers<[1], [0], [0], [1], [0, 0, 1, 1], [], []>} : vector<8x32xf32>, vector<32x96xf32>, vector<8x96xf32> -> vector<8x96xf32>
    %c0_59 = arith.constant 0 : index
    %c0_60 = arith.constant 0 : index
    %115 = vector.load %arg14[%c0_59, %c0_60] : memref<1x96xf32, #tpu.memory_space<vmem>>, vector<1x96xf32>
    %116 = vector.shape_cast %115 : vector<1x96xf32> to vector<96xf32>
    %117 = vector.shape_cast %116 : vector<96xf32> to vector<1x96xf32>
    %118 = vector.broadcast %117 : vector<1x96xf32> to vector<8x96xf32>
    %119 = arith.addf %114, %118 : vector<8x96xf32>
    %cst_61 = arith.constant 0.000000e+00 : f32
    %120 = vector.broadcast %cst_61 : f32 to vector<8x96xf32>
    %121 = arith.maximumf %119, %120 : vector<8x96xf32>
    %c0_62 = arith.constant 0 : index
    %c0_63 = arith.constant 0 : index
    %122 = vector.load %arg23[%c0_62, %c0_63] : memref<96x32xf32, #tpu.memory_space<vmem>>, vector<96x32xf32>
    %cst_64 = arith.constant dense<0.000000e+00> : vector<8x32xf32>
    %123 = tpu.matmul %121, %122, %cst_64 {dimension_numbers = #tpu.dot_dimension_numbers<[1], [0], [0], [1], [0, 0, 1, 1], [], []>} : vector<8x96xf32>, vector<96x32xf32>, vector<8x32xf32> -> vector<8x32xf32>
    %c0_65 = arith.constant 0 : index
    %c0_66 = arith.constant 0 : index
    %124 = vector.load %arg15[%c0_65, %c0_66] : memref<1x32xf32, #tpu.memory_space<vmem>>, vector<1x32xf32>
    %125 = vector.shape_cast %124 : vector<1x32xf32> to vector<32xf32>
    %126 = vector.shape_cast %125 : vector<32xf32> to vector<1x32xf32>
    %127 = vector.broadcast %126 : vector<1x32xf32> to vector<8x32xf32>
    %128 = arith.addf %123, %127 : vector<8x32xf32>
    %129 = arith.addf %112, %128 : vector<8x32xf32>
    %c0_67 = arith.constant 0 : index
    %c0_68 = arith.constant 0 : index
    %130 = vector.load %arg16[%c0_67, %c0_68] : memref<1x32xf32, #tpu.memory_space<vmem>>, vector<1x32xf32>
    %131 = vector.shape_cast %130 : vector<1x32xf32> to vector<32xf32>
    %c0_69 = arith.constant 0 : index
    %c0_70 = arith.constant 0 : index
    %132 = vector.load %arg17[%c0_69, %c0_70] : memref<1x32xf32, #tpu.memory_space<vmem>>, vector<1x32xf32>
    %133 = vector.shape_cast %132 : vector<1x32xf32> to vector<32xf32>
    %cst_71 = arith.constant dense<0.000000e+00> : vector<8xf32>
    %134 = vector.multi_reduction <add>, %129, %cst_71 [1] : vector<8x32xf32> to vector<8xf32>
    %135 = vector.shape_cast %134 : vector<8xf32> to vector<8x1xf32>
    %cst_72 = arith.constant 3.200000e+01 : f32
    %136 = vector.broadcast %cst_72 : f32 to vector<8x1xf32>
    %137 = arith.divf %135, %136 : vector<8x1xf32>
    %138 = vector.broadcast %137 : vector<8x1xf32> to vector<8x32xf32>
    %139 = arith.subf %129, %138 : vector<8x32xf32>
    %140 = arith.mulf %139, %139 : vector<8x32xf32>
    %cst_73 = arith.constant dense<0.000000e+00> : vector<8xf32>
    %141 = vector.multi_reduction <add>, %140, %cst_73 [1] : vector<8x32xf32> to vector<8xf32>
    %142 = vector.shape_cast %141 : vector<8xf32> to vector<8x1xf32>
    %cst_74 = arith.constant 3.200000e+01 : f32
    %143 = vector.broadcast %cst_74 : f32 to vector<8x1xf32>
    %144 = arith.divf %142, %143 : vector<8x1xf32>
    %145 = vector.broadcast %137 : vector<8x1xf32> to vector<8x32xf32>
    %146 = arith.subf %129, %145 : vector<8x32xf32>
    %cst_75 = arith.constant 9.99999974E-6 : f32
    %147 = vector.broadcast %cst_75 : f32 to vector<8x1xf32>
    %148 = arith.addf %144, %147 : vector<8x1xf32>
    %149 = math.rsqrt %148 : vector<8x1xf32>
    %150 = vector.broadcast %149 : vector<8x1xf32> to vector<8x32xf32>
    %151 = arith.mulf %146, %150 : vector<8x32xf32>
    %152 = vector.shape_cast %131 : vector<32xf32> to vector<1x32xf32>
    %153 = vector.broadcast %152 : vector<1x32xf32> to vector<8x32xf32>
    %154 = arith.mulf %151, %153 : vector<8x32xf32>
    %155 = vector.shape_cast %133 : vector<32xf32> to vector<1x32xf32>
    %156 = vector.broadcast %155 : vector<1x32xf32> to vector<8x32xf32>
    %157 = arith.addf %154, %156 : vector<8x32xf32>
    %c0_76 = arith.constant 0 : index
    %c0_77 = arith.constant 0 : index
    %c0_78 = arith.constant 0 : index
    %158 = vector.load %arg18[%c0_76, %c0_77, %c0_78] : memref<1x8x32xf32, #tpu.memory_space<vmem>>, vector<1x8x32xf32>
    %159 = vector.shape_cast %158 : vector<1x8x32xf32> to vector<8x32xf32>
    %160 = vector.shape_cast %157 : vector<8x32xf32> to vector<1x8x32xf32>
    tpu.vector_store %arg18[%c0_76, %c0_77, %c0_78], %160 {strides = array<i32>} : memref<1x8x32xf32, #tpu.memory_space<vmem>>, vector<1x8x32xf32>,
    return
  }
  func.func @transform_0(%arg0: i32, %arg1: i32) -> (i32, i32, i32) {
    %c0_i32 = arith.constant 0 : i32
    %c0_i32_0 = arith.constant 0 : i32
    return %arg0, %arg1, %c0_i32 : i32, i32, i32
  }
  func.func @transform_1(%arg0: i32, %arg1: i32) -> (i32, i32, i32) {
    %c0_i32 = arith.constant 0 : i32
    %c0_i32_0 = arith.constant 0 : i32
    %c0_i32_1 = arith.constant 0 : i32
    return %arg0, %c0_i32, %c0_i32_0 : i32, i32, i32
  }
  func.func @transform_7(%arg0: i32, %arg1: i32) -> (i32, i32) {
    %c0_i32 = arith.constant 0 : i32
    %c0_i32_0 = arith.constant 0 : i32
    %c0_i32_1 = arith.constant 0 : i32
    return %c0_i32, %c0_i32_0 : i32, i32
  }
  func.func @transform_8(%arg0: i32, %arg1: i32) -> (i32, i32) {
    %c0_i32 = arith.constant 0 : i32
    %c0_i32_0 = arith.constant 0 : i32
    %c0_i32_1 = arith.constant 0 : i32
    return %c0_i32, %c0_i32_0 : i32, i32
  }
  func.func @transform_9(%arg0: i32, %arg1: i32) -> (i32, i32) {
    %c0_i32 = arith.constant 0 : i32
    %c0_i32_0 = arith.constant 0 : i32
    %c0_i32_1 = arith.constant 0 : i32
    return %c0_i32, %c0_i32_0 : i32, i32
  }
  func.func @transform_10(%arg0: i32, %arg1: i32) -> (i32, i32) {
    %c0_i32 = arith.constant 0 : i32
    %c0_i32_0 = arith.constant 0 : i32
    %c0_i32_1 = arith.constant 0 : i32
    return %c0_i32, %c0_i32_0 : i32, i32
  }
  func.func @transform_11(%arg0: i32, %arg1: i32) -> (i32, i32) {
    %c0_i32 = arith.constant 0 : i32
    %c0_i32_0 = arith.constant 0 : i32
    %c0_i32_1 = arith.constant 0 : i32
    return %c0_i32, %c0_i32_0 : i32, i32
  }
  func.func @transform_12(%arg0: i32, %arg1: i32) -> (i32, i32) {
    %c0_i32 = arith.constant 0 : i32
    %c0_i32_0 = arith.constant 0 : i32
    %c0_i32_1 = arith.constant 0 : i32
    return %c0_i32, %c0_i32_0 : i32, i32
  }
  func.func @transform_13(%arg0: i32, %arg1: i32) -> (i32, i32) {
    %c0_i32 = arith.constant 0 : i32
    %c0_i32_0 = arith.constant 0 : i32
    %c0_i32_1 = arith.constant 0 : i32
    return %c0_i32, %c0_i32_0 : i32, i32
  }
  func.func @transform_14(%arg0: i32, %arg1: i32) -> (i32, i32) {
    %c0_i32 = arith.constant 0 : i32
    %c0_i32_0 = arith.constant 0 : i32
    %c0_i32_1 = arith.constant 0 : i32
    return %c0_i32, %c0_i32_0 : i32, i32
  }
  func.func @transform_15(%arg0: i32, %arg1: i32) -> (i32, i32) {
    %c0_i32 = arith.constant 0 : i32
    %c0_i32_0 = arith.constant 0 : i32
    %c0_i32_1 = arith.constant 0 : i32
    return %c0_i32, %c0_i32_0 : i32, i32
  }
  func.func @transform_16(%arg0: i32, %arg1: i32) -> (i32, i32, i32) {
    %c0_i32 = arith.constant 0 : i32
    %c0_i32_0 = arith.constant 0 : i32
    return %arg0, %arg1, %c0_i32 : i32, i32, i32
  }
}

</mosaic_0001>

<bundles_post_ra>
// kernel: tpu_custom_call.1
= control target key start
LH: loop header
LB: loop body
LE: loop exit
PB: predicated region body
PF: predicated region fallthrough
CT: control target
= control target key end

     0   :  { %s3120_s0 = inlined_call_operand.vmem [shape: f32[2,16,32], index: 0, kind: input, shape index: {}]   ;;  %s3121_s1 = inlined_call_operand.vmem [shape: f32[2,16,32], index: 1, kind: input, shape index: {}]   ;;  %s3122_s2 = inlined_call_operand.vmem [shape: f32[32,32], index: 2, kind: input, shape index: {}]   ;;  %s3123_s3 = inlined_call_operand.vmem [shape: f32[32,64], index: 3, kind: input, shape index: {}]   ;;  %s3124_s4 = inlined_call_operand.hbm [shape: f32[32,32], index: 4, kind: input, shape index: {}]   ;;  %s3125_s5 = inlined_call_operand.hbm [shape: f32[32,96], index: 5, kind: input, shape index: {}]   ;;  %s3126_s6 = inlined_call_operand.vmem [shape: f32[96,32], index: 6, kind: input, shape index: {}]   ;;  %s3127_s7 = inlined_call_operand.vmem [shape: f32[1,32], index: 7, kind: input, shape index: {}]   ;;  %s3128_s8 = inlined_call_operand.vmem [shape: f32[1,64], index: 8, kind: input, shape index: {}]   ;;  %s3129_s9 = inlined_call_operand.vmem [shape: f32[1,32], index: 9, kind: input, shape index: {}]   ;;  %s3130_s10 = inlined_call_operand.vmem [shape: f32[1,32], index: 10, kind: input, shape index: {}]   ;;  %s3131_s11 = inlined_call_operand.vmem [shape: f32[1,32], index: 11, kind: input, shape index: {}]   ;;  %s3132_s12 = inlined_call_operand.vmem [shape: f32[1,96], index: 12, kind: input, shape index: {}]   ;;  %s3133_s13 = inlined_call_operand.vmem [shape: f32[1,32], index: 13, kind: input, shape index: {}]   ;;  %s3134_s14 = inlined_call_operand.vmem [shape: f32[1,32], index: 14, kind: input, shape index: {}]   ;;  %s3135_s15 = inlined_call_operand.vmem [shape: f32[1,32], index: 15, kind: input, shape index: {}]   ;;  %s3136_s16 = inlined_call_operand.hbm [shape: f32[2,16,32], index: 16, kind: output, shape index: {}]  }
   0x1   :  { %3152 = sst [smem:[#allocation39_spill]] %s3120_s0 }
   0x2   :  { %3153 = sst [smem:[#allocation40_spill]] %s3121_s1 }
   0x3   :  { %3154 = sst [smem:[#allocation41_spill]] %s3134_s14 }
   0x4   :  { %3155 = sst [smem:[#allocation42_spill]] %s3135_s15 }
   0x5   :  { %3156 = sst [smem:[#allocation43_spill]] %s3136_s16 }
   0x6   :  { %21 = vsyncpa [#allocation11], 0 }
   0x7   :  { %23 = vsyncpa [#allocation11 + $0x1], 0  ;;  %s2732_s21 = smov 0   ;;  %s2734_s22 = smov 0  }
   0x8   :  { %s2736_s23 = smov 0   ;;  %s2738_s24 = smov 0  }
   0x9   :  { %s2740_s25 = smov 0   ;;  %s2742_s26 = smov 0  }
   0xa   :  { %s2744_s27 = smov 0   ;;  %s2746_s28 = smov 0  }
   0xb LB: > { %3157 = sst [smem:[#allocation27_spill]] %s2601_s21  ;;  %s2030_s29 = sadd.s32 4294967295, %s2629_s28   ;;  %s2629_s28 = sphi %s2746_s28, %s29_s28   ;;  %s2625_s27 = sphi %s2744_s27, %s3193_s27   ;;  %s2621_s26 = sphi %s2742_s26, %s3192_s26   ;;  %s2617_s25 = sphi %s2740_s25, %s3191_s25   ;;  %s2613_s24 = sphi %s2738_s24, %s3190_s24   ;;  %s2609_s23 = sphi %s2736_s23, %s3189_s23   ;;  %s2605_s22 = sphi %s2734_s22, %s3188_s22   ;;  %s2601_s21 = sphi %s2732_s21, %s3187_s21  }
   0xc   : > { %3158 = sst [smem:[#allocation28_spill]] %s2605_s22  ;;  %s2031_s30 = sadd.s32 4294967294, %s2629_s28  }
   0xd   : > { %3159 = sst [smem:[#allocation29_spill]] %s2609_s23  ;;  %s38_s0 = sadd.s32 1, %s2621_s26 }
   0xe   : > { %3160 = sst [smem:[#allocation30_spill]] %s2617_s25  ;;  %p39_p0 = scmp.ge.s32.totalorder %s38_s0, 2 }
   0xf   : > { %3161 = sst [smem:[#allocation31_spill]] %s2621_s26  ;;  %s41_s17 = sadd.s32 1, %s2625_s27 }
  0x10   : > { %3162 = sst [smem:[#allocation32_spill]] %s2625_s27  ;;  %p303_p1 = scmp.ne.s32.totalorder %s2609_s23, %s2605_s22 }
  0x11   : > { %3163 = sst [smem:[#allocation33_spill]] %s2629_s28  ;;  %p304_p2 = scmp.eq.s32.totalorder %s2030_s29, 3 }
  0x12   : > { %s3195_s0 = smov (%p39_p0, %s38_s0), 0  ;;  %s3197_s17 = smov (!%p39_p0, %s41_s17), %s2625_s27 }
  0x13   : > { %3164 = sst [smem:[#allocation34_spill]] %s3195_s0  ;;  %s289_s18 = ssub.s32 %s2621_s26, %s3195_s0 }
  0x14   : > { %p2783_p3 = por %p304_p2, %p303_p1  ;;  %p43_p4 = scmp.ge.s32.totalorder %s3197_s17, 2 }
  0x15   : > { %p309_p5 = scmp.ne.s32.totalorder %s2605_s22, %s2601_s21  ;;  %p310_p6 = scmp.eq.s32.totalorder %s2031_s30, 3 }
  0x16   : > { %s3165_s19 = scalar_select %p2783_p3, 1, 0 }
  0x17   : > { %p2034_p7 = scmp.ge.s32.totalorder %s2629_s28, 1  ;;  %s3199_s17 = smov (%p43_p4, %s3197_s17), 0 }
  0x18   : > { %3166 = sst [smem:[#allocation35_spill]] %s3165_s19  ;;  %p2792_p8 = por %p310_p6, %p309_p5 }
  0x19   : > { %3167 = sst [smem:[#allocation36_spill]] %s3199_s17  ;;  %p374_p9 = scmp.lt.s32.totalorder %s2629_s28, 5 }
  0x1a   : > { %s3168_s20 = scalar_select %p2792_p8, 1, 0 }
  0x1b   : > { %s288_s29 = ssub.s32 %s2625_s27, %s3199_s17  ;;  %s293_s16 = sadd.s32 1, %s2609_s23 }
  0x1c   : > { %3169 = sst [smem:[#allocation37_spill]] %s3168_s20  ;;  %s290_s15 = sor.u32 %s289_s18, %s288_s29 }
  0x1d   : > { %p375_p10 = pnand %p2034_p7, %p374_p9  ;;  %p291_p11 = scmp.eq.s32.totalorder %s290_s15, 0 }
  0x1e   : > { %s3149_s30 = sand.u32 (!%p375_p10), 1, %s2605_s22   ;;  %p422_p12 = scmp.lt.s32.totalorder (!%p375_p10), %s2617_s25, 1 }
  0x1f   : > { %s2801_s0 = scalar_select %p291_p11, %s2609_s23, %s293_s16  }
  0x20   : > { %378 = sbr.rel (%p375_p10) target bundleno = 4297 (0x10c9), region = 64  ;;  %s2807_s26 = sshll.u32 (!%p375_p10), %s3149_s30, 3 }
  0x21   : > { %3170 = sst [smem:[#allocation38_spill]] %s2801_s0  ;;  %p424_p13 = scmp.lt.s32.totalorder (!%p375_p10), %s2613_s24, 1 }
  0x22   : > { %s3171_s1 = sld [smem:[#allocation40_spill]] (!%p375_p10)  ;;  %s3172_s14 = sld [smem:[#allocation39_spill]] (!%p375_p10) }
  0x23   : > { %p2040_p0 = scmp.ne.s32.totalorder (!%p375_p10), %s2613_s24, 0 }
  0x27   : > { %s423_s17 = scalar_select %p422_p12, %s2617_s25, 1 }
  0x28   : > { %s425_s18 = scalar_select %p424_p13, %s2613_s24, 1 }
  0x29   : > { %s2036_s29 = sshll.u32 %s423_s17, 1  ;;  %s2082_s15 = sshll.u32 %s423_s17, 4  ;;  %v2827_v1 = vld [vmem:[%s3123_s3] sm:$0xff] (!%p2040_p0)  ;;  %v2832_v2 = vld [vmem:[%s3123_s3 + $0x8] sm:$0xff] (!%p2040_p0)  ;;  %v2837_v3 = vld [vmem:[%s3123_s3 + $0x10] sm:$0xff] (!%p2040_p0) }
  0x2a   : > { %s427_s16 = sadd.s32 %s2036_s29, %s425_s18  ;;  %s2815_s23 = scalar_lea.vmem %s3171_s1, %s2082_s15  ;;  %v2842_v4 = vld [vmem:[%s3123_s3 + $0x18] sm:$0xff] (!%p2040_p0) }
  0x2b   : > { %s2037_s20 = sshll.u32 %s427_s16, 3  ;;  %439 = sbr.rel (%p2040_p0) target bundleno = 322 (0x142), region = 68 }
  0x2c   : > { %s429_s19 = scalar_lea.vmem %s3172_s14, %s2037_s20 }
  0x2d   : > { %v2820_v0 = vld [vmem:[%s429_s19] sm:$0xff] }
  0x32   : > { %487 = vsyncadd [#allocation9], 512  ;;  %v521_v5 = vld [vmem:[%s3122_s2] sm:$0xff]  ;;  %v523_v6 = vld [vmem:[%s3122_s2 + $0x8] sm:$0xff] }
  0x33   : > { %522 = vst [vmem:[#allocation2] sm:$0xff] %v521_v5  ;;  %524 = vst [vmem:[#allocation2 + $0x8] sm:$0xff] %v523_v6  ;;  %v525_v7 = vld [vmem:[%s3122_s2 + $0x10] sm:$0xff]  ;;  %v527_v8 = vld [vmem:[%s3122_s2 + $0x18] sm:$0xff] }
  0x34   : > { %526 = vst [vmem:[#allocation2 + $0x10] sm:$0xff] %v525_v7  ;;  %528 = vst [vmem:[#allocation2 + $0x18] sm:$0xff] %v527_v8 }
  0x35   : > { %536 = vsyncadd [#allocation9 + $0x1], 512  ;;  %v594_v9 = vld [vmem:[%s3126_s6] sm:$0xff]  ;;  %v596_v10 = vld [vmem:[%s3126_s6 + $0x8] sm:$0xff]  ;;  %s2631_s14 = smov [#allocation4]   ;;  %s2632_s28 = smov [#allocation5]  }
  0x36   : > { %s545_s21 = sshll.u32 %s2631_s14, 4  ;;  %s557_s22 = sshll.u32 %s2632_s28, 4  ;;  %595 = vst [vmem:[#allocation6] sm:$0xff] %v594_v9  ;;  %597 = vst [vmem:[#allocation6 + $0x8] sm:$0xff] %v596_v10  ;;  %v598_v11 = vld [vmem:[%s3126_s6 + $0x10] sm:$0xff]  ;;  %v600_v12 = vld [vmem:[%s3126_s6 + $0x18] sm:$0xff]  ;;  %s546_s21 = int_to_ptr.vmem [resolvable:$true] %s545_s21  ;;  %s2871_s22 = int_to_ptr.vmem [resolvable:$true] %s557_s22 }
  0x37   : > { %v602_v13 = vld [vmem:[%s3126_s6 + $0x20] sm:$0xff]  ;;  %599 = vst [vmem:[#allocation6 + $0x10] sm:$0xff] %v598_v11  ;;  %601 = vst [vmem:[#allocation6 + $0x18] sm:$0xff] %v600_v12  ;;  %v604_v14 = vld [vmem:[%s3126_s6 + $0x28] sm:$0xff]  ;;  %s2481_s20 = scalar_lea.hbm %s3124_s4, 512 }
  0x38   : > { %603 = vst [vmem:[#allocation6 + $0x20] sm:$0xff] %v602_v13  ;;  %v606_v15 = vld [vmem:[%s3126_s6 + $0x30] sm:$0xff]  ;;  %v608_v16 = vld [vmem:[%s3126_s6 + $0x38] sm:$0xff]  ;;  %p2482_p1 = scmp.ne.s32.totalorder %s3124_s4, %s2481_s20  ;;  %p2485_p2 = scmp.lt.u32.totalorder %s2481_s20, %s3124_s4 }
  0x3a   : > { %p2487_p4 = pnand %p2485_p2, %p2482_p1 }
  0x3c   : > { %2490 = shalt.err (!%p2487_p4)  }
  0x3d   : > { %s2491_s17 = scalar_lea.vmem %s546_s21, 512  ;;  %p2496_p6 = scmp.lt.s32.totalorder %s546_s21, %s546_s21 }
  0x3e   : > { %p2492_p5 = scmp.ne.s32.totalorder %s546_s21, %s2491_s17  ;;  %p2497_p7 = scmp.lt.s32.totalorder %s2491_s17, %s2491_s17 }
  0x40   : > { %p2498_p9 = por %p2497_p7, %p2496_p6 }
  0x42   : > { %p2499_p10 = pnand %p2498_p9, %p2492_p5 }
  0x44   : > { %2502 = shalt.err (!%p2499_p10)  }
  0x45   : > { %548 = dma.hbm_to_vmem [thread:$0]  %s3124_s4, 512, %s546_s21, [#allocation9 + $0x2]  ;;  %605 = vst [vmem:[#allocation6 + $0x28] sm:$0xff] %v604_v14  ;;  %607 = vst [vmem:[#allocation6 + $0x30] sm:$0xff] %v606_v15  ;;  %v610_v17 = vld [vmem:[%s3126_s6 + $0x40] sm:$0xff]  ;;  %v612_v18 = vld [vmem:[%s3126_s6 + $0x48] sm:$0xff] }
  0x46   : > { %609 = vst [vmem:[#allocation6 + $0x38] sm:$0xff] %v608_v16  ;;  %v614_v19 = vld [vmem:[%s3126_s6 + $0x50] sm:$0xff]  ;;  %s2503_s15 = scalar_lea.hbm %s3125_s5, 512 }
  0x47   : > { %p2504_p11 = scmp.ne.s32.totalorder %s3125_s5, %s2503_s15  ;;  %p2507_p12 = scmp.lt.u32.totalorder %s2503_s15, %s3125_s5 }
  0x49   : > { %p2509_p13 = pnand %p2507_p12, %p2504_p11 }
  0x4b   : > { %2512 = shalt.err (!%p2509_p13)  }
  0x4c   : > { %s2513_s0 = scalar_lea.vmem %s2871_s22, 512  ;;  %p2518_p1 = scmp.lt.s32.totalorder %s2871_s22, %s2871_s22 }
  0x4d   : > { %p2514_p0 = scmp.ne.s32.totalorder %s2871_s22, %s2513_s0  ;;  %p2519_p2 = scmp.lt.s32.totalorder %s2513_s0, %s2513_s0 }
  0x4f   : > { %p2520_p4 = por %p2519_p2, %p2518_p1 }
  0x51   : > { %p2521_p5 = pnand %p2520_p4, %p2514_p0 }
  0x53   : > { %2524 = shalt.err (!%p2521_p5)  }
  0x54   : > { %560 = dma.hbm_to_vmem [thread:$0]  %s3125_s5, 512, %s2871_s22, [#allocation9 + $0x3]  ;;  %611 = vst [vmem:[#allocation6 + $0x40] sm:$0xff] %v610_v17  ;;  %613 = vst [vmem:[#allocation6 + $0x48] sm:$0xff] %v612_v18  ;;  %v616_v20 = vld [vmem:[%s3126_s6 + $0x58] sm:$0xff] }
  0x55   : > { %615 = vst [vmem:[#allocation6 + $0x50] sm:$0xff] %v614_v19  ;;  %617 = vst [vmem:[#allocation6 + $0x58] sm:$0xff] %v616_v20 }
  0x56   : > { %625 = vsyncadd [#allocation9 + $0x4], 1536 }
  0x57   : > { %2585 = dma.done.wait [#allocation9], 512 }
  0x58   : > { %2586 = vsyncadd [#allocation9], 4294966784  ;;  %v2268_v21 = vpack.c.bf16 %v2832_v2, %v2827_v1  ;;  %v2272_v22 = vpack.c.bf16 %v2842_v4, %v2837_v3  ;;  %vm642_vm0 = vcmask 261120   ;;  %v629_v23 = vld [vmem:[%s2815_s23] sm:$0xff]  ;;  %v630_v24 = vld [vmem:[%s2815_s23 + $0x8] sm:$0xff]  ;;  %vm724_vm1 = vcmask 523264  }
  0x59   : > { %2149 = vmatprep.mubr.msk.f32.mxu0 %vm642_vm0, %v629_v23  ;;  %v2041_v25 = vld [vmem:[%s3128_s8] ss:$0 sm:$0xff] }
  0x5a   : > { %2269 = vmatprep.subr.bf16.mxu0 %v2268_v21 }
  0x5b   : > { %2271 = vmatpush3.bf16.msra.mxu0 %v2268_v21 }
  0x5c   : > { %2273 = vmatprep.subr.bf16.mxu0 %v2272_v22 }
  0x5f   : > { %2275 = vmatpush3.bf16.msra.mxu0 %v2272_v22 }
  0x62   : > { %2150 = vmatmul.mubr.msk.f32.vlgmr.msra.gmra.mrb[0].mxu0 %vm642_vm0, %v630_v24 }
 0x135   : > { %v2151_v26 = vpop.f32.mrb[0].mxu0 }
 0x136   : > { %v721_v27 = vadd.f32 %v2151_v26, %v2041_v25  ;;  %v715_v28 = vpop.f32.mrb[1].mxu0 }
 0x137   : > { %v716_v29 = vadd.f32 %v2041_v25, %v715_v28 }
 0x138   : > { %726 = vst.msk [vmem:[#allocation7 + $0x8] sm:$0xff] %vm724_vm1, %v721_v27 }
 0x139   : > { %725 = vst.msk [vmem:[#allocation7] sm:$0xff] %vm724_vm1, %v716_v29 }
 0x13a   : > { %2587 = dma.done.wait [#allocation9 + $0x1], 512 }
 0x13b   : > { %2588 = vsyncadd [#allocation9 + $0x1], 4294966784 }
 0x13c   : > { %2589 = dma.done.wait [#allocation9 + $0x2], 512 }
 0x13d   : > { %2590 = vsyncadd [#allocation9 + $0x2], 4294966784 }
 0x13e   : > { %2591 = dma.done.wait [#allocation9 + $0x3], 512 }
 0x13f   : > { %2592 = vsyncadd [#allocation9 + $0x3], 4294966784 }
 0x140   : > { %2593 = dma.done.wait [#allocation9 + $0x4], 1536 }
 0x141   : > { %2594 = vsyncadd [#allocation9 + $0x4], 4294965760 }
 0x142 PF: > { %v736_v30 = vld [vmem:[#allocation2] sm:$0xff]  ;;  %v737_v31 = vld [vmem:[#allocation2 + $0x8] sm:$0xff]  ;;  %v738_v32 = vld [vmem:[#allocation2 + $0x10] sm:$0xff]  ;;  %v2633_v33 = vmov 0.0|0.0   ;;  %vm2634_vm2 = vmmov 0   ;;  %v2635_v36 = vmov 0.0  }
 0x143   : > { %2276 = vmatprep.subr.bf16.mxu1 %v2633_v33  ;;  %v2277_v34 = vpack.c.bf16 %v737_v31, %v736_v30  ;;  %v739_v35 = vld [vmem:[#allocation2 + $0x18] sm:$0xff]  ;;  %2160 = vmatprep.mubr.msk.f32.mxu1 %vm2634_vm2, %v2635_v36  ;;  %vm747_vm3 = vcmask 261120   ;;  %v821_v38 = vld [vmem:[#allocation7] sm:$0xff]  ;;  %v822_v39 = vld [vmem:[#allocation7 + $0x8] sm:$0xff]  ;;  %vm823_vm4 = vcmask 64512   ;;  %vm903_vm6 = vcmask 130048  }
 0x144   : > { %2293 = vmatprep.subr.bf16.mxu0 %v2633_v33  ;;  %2188 = vmatprep.mubr.msk.f32.mxu0 %vm2634_vm2, %v2635_v36  ;;  %v2280_v37 = vpack.c.bf16 %v739_v35, %v738_v32  ;;  %v2283_v40 = vpack.c.bf16 %v822_v39, %v821_v38  ;;  %vm2946_vm5 = vmpackc.low %vm823_vm4, %vm823_vm4  ;;  %v2044_v42 = vld [vmem:[%s3127_s7] ss:$0 sm:$0xff]  ;;  %v2963_v49 = vpack.i.bf16 %v822_v39, %v821_v38  ;;  %s2636_s20 = smov 96   ;;  %s2637_s29 = smov 120   ;;  %vm1175_vm7 = vcmask 130112  }
 0x145   : > { %2278 = vmatpush3.bf16.msra.mxu1 %v2277_v34  ;;  %s2638_s15 = smov 88   ;;  %s2639_s21 = smov 112   ;;  %vm1357_vm8 = vcmask 195712   ;;  %vm1539_vm9 = vcmask 261312   ;;  %vm1761_vm10 = vcmask 785408  }
 0x146   : > { %2279 = vmatprep.subr.bf16.mxu1 %v2633_v33  ;;  %2427 = vrot.lane.b32.xlu1 %v2963_v49, %s2636_s20  ;;  %s2640_s16 = smov 80   ;;  %s2641_s17 = smov 104  }
 0x147   : > { %s2642_s27 = smov 72   ;;  %s2643_s0 = smov 16  }
 0x148   : > { %s2644_s18 = smov 8   ;;  %s2645_s14 = smov 24  }
 0x149   : > { %2281 = vmatpush3.bf16.msra.mxu1 %v2280_v37  ;;  %s3178_s28 = sld [smem:[#allocation41_spill]]  ;;  %s3179_s23 = sld [smem:[#allocation42_spill]] }
 0x14a   : > { %2282 = vmatprep.subr.bf16.mxu1 %v2633_v33  ;;  %2432 = vrot.lane.b32.xlu1 %v2963_v49, %s2637_s29  ;;  %s3180_s20 = scalar_lea.vmem [#allocation10], %s2807_s26  ;;  %s2646_s30 = smov [#allocation10]  }
 0x14c   : > { %2161 = vmatmul.mubr.msk.f32.vlgmr.msra.gmra.mrb[0].mxu1 %vm747_vm3, %v2820_v0 }
 0x14d   : > { %2167 = vmatprep.mubr.msk.f32.mxu1 %vm2634_vm2, %v2635_v36 }
 0x152   : > { %2285 = vmatpush3.bf16.xpose.msk.msra.mxu1 %vm2946_vm5, %v2283_v40 }
 0x153   : > { %2286 = vmatprep.subr.bf16.mxu1 %v2633_v33 }
 0x1b8   : > { %v2428_v55 = vpop.permute.xlu1 %2427 }
 0x1b9   : > { %v2430_v56 = vunpack.i.h.bf16 %v2428_v55  ;;  %v2429_v57 = vunpack.i.l.bf16 %v2428_v55 }
 0x1bb   : > { %v2287_v58 = vpack.c.bf16 %v2430_v56, %v2429_v57 }
 0x1bc   : > { %v2433_v60 = vpop.permute.xlu1 %2432 }
 0x1bd   : > { %v2435_v61 = vunpack.i.h.bf16 %v2433_v60  ;;  %v2434_v62 = vunpack.i.l.bf16 %v2433_v60 }
 0x1bf   : > { %v2290_v1 = vpack.c.bf16 %v2435_v61, %v2434_v62 }
 0x21f   : > { %v817_v43 = vpop.f32.mrb[0].mxu1 }
 0x220   : > { %v2956_v44 = vadd.f32 %v2044_v42, %v817_v43  ;;  %v2162_v45 = vpop.f32.mrb[1].mxu1 }
 0x222   : > { %2168 = vmatmul.mubr.msk.f32.vlgmr.msra.gmra.mrb[2].mxu1 %vm823_vm4, %v2956_v44 }
 0x223   : > { %2174 = vmatprep.mubr.msk.f32.mxu1 %vm2634_vm2, %v2635_v36  ;;  %2288 = vmatpush3.bf16.msra.mxu1 %v2287_v58 }
 0x224   : > { %2289 = vmatprep.subr.bf16.mxu1 %v2633_v33 }
 0x2f5   : > { %v899_v46 = vpop.f32.mrb[2].mxu1 }
 0x2f6   : > { %v2169_v47 = vpop.f32.mrb[3].mxu1  ;;  %v904_v48 = vsel %vm903_vm6, %v899_v46, -inf }
 0x2f7   : > { %905 = vmax.xlane.f32.xlu0 %v904_v48 }
 0x384   : > { %v906_v50 = vpop.xlane.xlu0 %905 }
 0x385   : > { %v907_v51 = vsub.f32 %v899_v46, %v906_v50 }
 0x387   : > { %v908_v52 = vmul.f32 1.442695, %v907_v51 }
 0x389   : > { %2461 = vpow2.f32 %v908_v52 }
 0x393   : > { %v2462_v53 = vpop.eup %2461 }
 0x394   : > { %v910_v54 = vsel %vm903_vm6, %v2462_v53, 0.0 }
 0x395   : > { %911 = vadd.xlane.f32.xlu0 %v910_v54 }
 0x3ab   : > { %997 = vrot.lane.b32.xlu0 %v2956_v44, %s2637_s29  ;;  %s1882_s29 = sshll.u32 %s3180_s20, 4  ;;  %s3064_s29 = int_to_ptr.vmem [resolvable:$true] %s1882_s29 }
 0x422   : > { %v912_v59 = vpop.xlane.xlu0 %911 }
 0x423   : > { %2463 = vrcp.f32 %v912_v59 }
 0x426   : > { %v998_v3 = vpop.permute.xlu0 %997 }
 0x42d   : > { %v2464_v63 = vpop.eup %2463 }
 0x42e   : > { %v914_v2 = vmul.f32 %v2464_v63, %v2462_v53 }
 0x430   : > { %2175 = vmatmul.mubr.msk.f32.vlgmr.msra.gmra.mrb[4].mxu1 %vm903_vm6, %v914_v2 }
 0x431   : > { %2292 = vmatpush3.bf16.xpose.msk.msra.mxu1 %vm2946_vm5, %v2290_v1  ;;  %2181 = vmatprep.mubr.msk.f32.mxu1 %vm2634_vm2, %v2635_v36 }
 0x432   : > { %2300 = vmatprep.subr.bf16.mxu1 %v2633_v33 }
 0x438   : > { %2182 = vmatmul.mubr.msk.f32.vlgmr.msra.gmra.mrb[6].mxu1 %vm823_vm4, %v998_v3 }
 0x439   : > { %2202 = vmatprep.mubr.msk.f32.mxu1 %vm2634_vm2, %v2635_v36 }
 0x503   : > { %v990_v4 = vpop.f32.mrb[4].mxu1 }
 0x504   : > { %994 = vst.msk [vmem:[#allocation8] sm:$0xff] %vm823_vm4, %v990_v4  ;;  %v2176_v5 = vpop.f32.mrb[5].mxu1 }
 0x50b   : > { %v1077_v6 = vpop.f32.mrb[6].mxu1 }
 0x50c   : > { %v2183_v7 = vpop.f32.mrb[7].mxu1  ;;  %v1081_v8 = vsel %vm903_vm6, %v1077_v6, -inf }
 0x50d   : > { %1082 = vmax.xlane.f32.xlu1 %v1081_v8  ;;  %v1543_v7 = vld [vmem:[#allocation4 + $0x8] sm:$0xff] }
 0x51e   : > { %2437 = vrot.lane.b32.xlu1 %v2963_v49, %s2638_s15 }
 0x522   : > { %1179 = vrot.lane.b32.xlu1 %v2956_v44, %s2639_s21 }
 0x59a   : > { %v1083_v9 = vpop.xlane.xlu1 %1082 }
 0x59b   : > { %v1084_v10 = vsub.f32 %v1077_v6, %v1083_v9  ;;  %v1542_v6 = vld [vmem:[#allocation4] sm:$0xff]  ;;  %v1544_v9 = vld [vmem:[#allocation4 + $0x10] sm:$0xff] }
 0x59c   : > { %v2311_v8 = vpack.c.bf16 %v1543_v7, %v1542_v6 }
 0x59d   : > { %v1085_v11 = vmul.f32 1.442695, %v1084_v10  ;;  %v1545_v10 = vld [vmem:[#allocation4 + $0x18] sm:$0xff] }
 0x59e   : > { %v2438_v14 = vpop.permute.xlu1 %2437 }
 0x59f   : > { %2465 = vpow2.f32 %v1085_v11  ;;  %v2440_v15 = vunpack.i.h.bf16 %v2438_v14  ;;  %v2439_v16 = vunpack.i.l.bf16 %v2438_v14  ;;  %v2314_v11 = vpack.c.bf16 %v1545_v10, %v1544_v9 }
 0x5a1   : > { %v2294_v17 = vpack.c.bf16 %v2440_v15, %v2439_v16  ;;  %v2062_v16 = vld [vmem:[%s3129_s9] ss:$0 sm:$0xff] }
 0x5a2   : > { %v1180_v25 = vpop.permute.xlu1 %1179 }
 0x5a3   : > { %2295 = vmatpush3.bf16.msra.mxu0 %v2294_v17 }
 0x5a4   : > { %2296 = vmatprep.subr.bf16.mxu0 %v2633_v33 }
 0x5a9   : > { %v2466_v12 = vpop.eup %2465 }
 0x5aa   : > { %v1087_v13 = vsel %vm903_vm6, %v2466_v12, 0.0 }
 0x5ab   : > { %1088 = vadd.xlane.f32.xlu0 %v1087_v13 }
 0x5c1   : > { %2442 = vrot.lane.b32.xlu0 %v2963_v49, %s2639_s21 }
 0x638   : > { %v1089_v18 = vpop.xlane.xlu0 %1088 }
 0x639   : > { %2467 = vrcp.f32 %v1089_v18 }
 0x63c   : > { %v2443_v19 = vpop.permute.xlu0 %2442 }
 0x63d   : > { %v2445_v20 = vunpack.i.h.bf16 %v2443_v19  ;;  %v2444_v21 = vunpack.i.l.bf16 %v2443_v19 }
 0x63f   : > { %v2297_v23 = vpack.c.bf16 %v2445_v20, %v2444_v21 }
 0x643   : > { %v2468_v22 = vpop.eup %2467 }
 0x644   : > { %v1091_v24 = vmul.f32 %v2468_v22, %v2466_v12 }
 0x646   : > { %2189 = vmatmul.mubr.msk.f32.vlgmr.msra.gmra.mrb[0].mxu0 %vm903_vm6, %v1091_v24 }
 0x647   : > { %2299 = vmatpush3.bf16.xpose.msk.msra.mxu0 %vm2946_vm5, %v2297_v23  ;;  %2195 = vmatprep.mubr.msk.f32.mxu0 %vm2634_vm2, %v2635_v36 }
 0x648   : > { %2307 = vmatprep.subr.bf16.mxu0 %v2633_v33 }
 0x64e   : > { %2196 = vmatmul.mubr.msk.f32.vlgmr.msra.gmra.mrb[2].mxu0 %vm823_vm4, %v1180_v25 }
 0x64f   : > { %2216 = vmatprep.mubr.msk.f32.mxu0 %vm2634_vm2, %v2635_v36 }
 0x719   : > { %v1167_v26 = vpop.f32.mrb[0].mxu0 }
 0x71a   : > { %v2190_v27 = vpop.f32.mrb[1].mxu0 }
 0x71b   : > { %v1658_v27 = vld [vmem:[#allocation5 + $0x8] sm:$0xff] }
 0x721   : > { %v1259_v28 = vpop.f32.mrb[2].mxu0 }
 0x722   : > { %v2197_v29 = vpop.f32.mrb[3].mxu0  ;;  %v1263_v30 = vsel %vm903_vm6, %v1259_v28, -inf }
 0x723   : > { %1264 = vmax.xlane.f32.xlu1 %v1263_v30  ;;  %v1659_v29 = vld [vmem:[#allocation5 + $0x10] sm:$0xff]  ;;  %v1660_v30 = vld [vmem:[#allocation5 + $0x18] sm:$0xff] }
 0x734   : > { %2447 = vrot.lane.b32.xlu1 %v2963_v49, %s2640_s16  ;;  %s3175_s16 = sld [smem:[#allocation30_spill]] }
 0x738   : > { %1361 = vrot.lane.b32.xlu1 %v2956_v44, %s2641_s17 }
 0x7b0   : > { %v1265_v31 = vpop.xlane.xlu1 %1264 }
 0x7b1   : > { %v1266_v32 = vsub.f32 %v1259_v28, %v1265_v31  ;;  %v2320_v31 = vpack.c.bf16 %v1660_v30, %v1659_v29 }
 0x7b3   : > { %v1267_v34 = vmul.f32 1.442695, %v1266_v32  ;;  %v1743_v32 = vld [vmem:[#allocation6 + $0x8] sm:$0xff] }
 0x7b4   : > { %v2448_v35 = vpop.permute.xlu1 %2447 }
 0x7b5   : > { %2469 = vpow2.f32 %v1267_v34  ;;  %v2450_v37 = vunpack.i.h.bf16 %v2448_v35  ;;  %v2449_v38 = vunpack.i.l.bf16 %v2448_v35  ;;  %v1744_v34 = vld [vmem:[#allocation6 + $0x10] sm:$0xff] }
 0x7b7   : > { %v2301_v39 = vpack.c.bf16 %v2450_v37, %v2449_v38  ;;  %v1745_v37 = vld [vmem:[#allocation6 + $0x18] sm:$0xff] }
 0x7b8   : > { %v1362_v51 = vpop.permute.xlu1 %1361  ;;  %v2326_v38 = vpack.c.bf16 %v1745_v37, %v1744_v34 }
 0x7b9   : > { %2302 = vmatpush3.bf16.msra.mxu1 %v2301_v39  ;;  %v1746_v39 = vld [vmem:[#allocation6 + $0x20] sm:$0xff] }
 0x7ba   : > { %2303 = vmatprep.subr.bf16.mxu1 %v2633_v33 }
 0x7bf   : > { %v2470_v40 = vpop.eup %2469 }
 0x7c0   : > { %v1269_v42 = vsel %vm903_vm6, %v2470_v40, 0.0 }
 0x7c1   : > { %1270 = vadd.xlane.f32.xlu0 %v1269_v42 }
 0x7d7   : > { %2452 = vrot.lane.b32.xlu0 %v2963_v49, %s2641_s17  ;;  %s3176_s17 = sld [smem:[#allocation28_spill]] }
 0x84e   : > { %v1271_v43 = vpop.xlane.xlu0 %1270 }
 0x84f   : > { %2471 = vrcp.f32 %v1271_v43  ;;  %v1748_v43 = vld [vmem:[#allocation6 + $0x30] sm:$0xff] }
 0x852   : > { %v2453_v44 = vpop.permute.xlu0 %2452 }
 0x853   : > { %v2455_v45 = vunpack.i.h.bf16 %v2453_v44  ;;  %v2454_v46 = vunpack.i.l.bf16 %v2453_v44  ;;  %v1749_v44 = vld [vmem:[#allocation6 + $0x38] sm:$0xff] }
 0x855   : > { %v2304_v48 = vpack.c.bf16 %v2455_v45, %v2454_v46  ;;  %v2332_v45 = vpack.c.bf16 %v1749_v44, %v1748_v43  ;;  %v1750_v46 = vld [vmem:[#allocation6 + $0x40] sm:$0xff] }
 0x859   : > { %v2472_v47 = vpop.eup %2471 }
 0x85a   : > { %v1273_v50 = vmul.f32 %v2472_v47, %v2470_v40  ;;  %v1747_v40 = vld [vmem:[#allocation6 + $0x28] sm:$0xff] }
 0x85b   : > { %v2329_v42 = vpack.c.bf16 %v1747_v40, %v1746_v39  ;;  %v1751_v47 = vld [vmem:[#allocation6 + $0x48] sm:$0xff] }
 0x85c   : > { %2203 = vmatmul.mubr.msk.f32.vlgmr.msra.gmra.mrb[8].mxu1 %vm903_vm6, %v1273_v50 }
 0x85d   : > { %2306 = vmatpush3.bf16.xpose.msk.msra.mxu1 %vm2946_vm5, %v2304_v48  ;;  %2209 = vmatprep.mubr.msk.f32.mxu1 %vm2634_vm2, %v2635_v36  ;;  %v2335_v48 = vpack.c.bf16 %v1751_v47, %v1750_v46 }
 0x85e   : > { %2316 = vmatprep.subr.bf16.mxu1 %v2633_v33 }
 0x864   : > { %2210 = vmatmul.mubr.msk.f32.vlgmr.msra.gmra.mrb[10].mxu1 %vm823_vm4, %v1362_v51 }
 0x865   : > { %2238 = vmatprep.mubr.msk.f32.mxu1 %vm2634_vm2, %v2635_v36 }
 0x92f   : > { %v1349_v52 = vpop.f32.mrb[8].mxu1 }
 0x930   : > { %v2204_v53 = vpop.f32.mrb[9].mxu1 }
 0x937   : > { %v1441_v54 = vpop.f32.mrb[10].mxu1 }
 0x938   : > { %v2211_v55 = vpop.f32.mrb[11].mxu1  ;;  %v1445_v56 = vsel %vm903_vm6, %v1441_v54, -inf }
 0x939   : > { %1446 = vmax.xlane.f32.xlu1 %v1445_v56  ;;  %v2065_v56 = vld [vmem:[%s3131_s11] ss:$0 sm:$0xff] }
 0x94a   : > { %2457 = vrot.lane.b32.xlu1 %v2963_v49, %s2642_s27  ;;  %s2073_s27 = sshll.u32 %s3175_s16, 1  ;;  %s3181_s16 = sld [smem:[#allocation43_spill]] }
 0x94e   : > { %1354 = vrot.lane.b32.xlu1 %v1349_v52, %s2643_s0 }
 0x9c6   : > { %v1447_v41 = vpop.xlane.xlu1 %1446 }
 0x9c7   : > { %v1448_v57 = vsub.f32 %v1441_v54, %v1447_v41  ;;  %v2064_v54 = vld [vmem:[%s3130_s10] ss:$0 sm:$0xff] }
 0x9c9   : > { %v1449_v58 = vmul.f32 1.442695, %v1448_v57 }
 0x9ca   : > { %v2458_v59 = vpop.permute.xlu1 %2457 }
 0x9cb   : > { %2473 = vpow2.f32 %v1449_v58  ;;  %v2460_v60 = vunpack.i.h.bf16 %v2458_v59  ;;  %v2459_v61 = vunpack.i.l.bf16 %v2458_v59  ;;  %v1752_v58 = vld [vmem:[#allocation6 + $0x50] sm:$0xff] }
 0x9cd   : > { %v2308_v62 = vpack.c.bf16 %v2460_v60, %v2459_v61  ;;  %v2066_v60 = vld [vmem:[%s3132_s12] ss:$0 sm:$0xff] }
 0x9ce   : > { %v1355_v3 = vpop.permute.xlu1 %1354 }
 0x9cf   : > { %2309 = vmatpush3.bf16.msra.mxu0 %v2308_v62 }
 0x9d0   : > { %2310 = vmatprep.subr.bf16.mxu0 %v2633_v33 }
 0x9d5   : > { %v2474_v63 = vpop.eup %2473 }
 0x9d6   : > { %v1451_v1 = vsel %vm903_vm6, %v2474_v63, 0.0 }
 0x9d7   : > { %1452 = vadd.xlane.f32.xlu0 %v1451_v1 }
 0x9ed   : > { %1172 = vrot.lane.b32.xlu0 %v1167_v26, %s2644_s18  ;;  %s1878_s18 = sadd.s32 %s2613_s24, %s2073_s27  ;;  %s3182_s24 = smov %s3180_s20 }
 0x9ee   : > { %s2074_s19 = sshll.u32 %s1878_s18, 7  ;;  %s3183_s27 = sand.u32 1, %s3176_s17  }
 0x9ef   : > { %s3062_s1 = scalar_lea.hbm %s3181_s16, %s2074_s19  ;;  %s2525_s18 = scalar_lea.vmem %s3064_s29, 128 }
 0x9f0   : > { %p2526_p6 = scmp.ne.s32.totalorder %s3064_s29, %s2525_s18 }
 0x9f2   : > { %p2527_p7 = pnand %p2526_p6, %p2783_p3 }
 0x9f4   : > { %p2528_p9 = pneg %p2527_p7 }
 0xa64   : > { %v1453_v49 = vpop.xlane.xlu0 %1452 }
 0xa65   : > { %2475 = vrcp.f32 %v1453_v49  ;;  %v2068_v49 = vld [vmem:[%s3133_s13] ss:$0 sm:$0xff] }
 0xa68   : > { %v1173_v2 = vpop.permute.xlu0 %1172 }
 0xa69   : > { %1176 = vst.msk [vmem:[#allocation8] sm:$0xff] %vm1175_vm7, %v1173_v2 }
 0xa6a   : > { %1358 = vst.msk [vmem:[#allocation8] sm:$0xff] %vm1357_vm8, %v1355_v3 }
 0xa6f   : > { %v2476_v4 = vpop.eup %2475 }
 0xa70   : > { %v1455_v5 = vmul.f32 %v2476_v4, %v2474_v63 }
 0xa72   : > { %2217 = vmatmul.mubr.msk.f32.vlgmr.msra.gmra.mrb[4].mxu0 %vm903_vm6, %v1455_v5 }
 0xa73   : > { %2227 = vmatprep.mubr.msk.f32.mxu0 %vm2634_vm2, %v2635_v36  ;;  %2312 = vmatpush3.bf16.msra.mxu0 %v2311_v8 }
 0xa74   : > { %2313 = vmatprep.subr.bf16.mxu0 %v2633_v33 }
 0xa77   : > { %2315 = vmatpush3.bf16.msra.mxu0 %v2314_v11 }
 0xa78   : > { %2322 = vmatprep.subr.bf16.mxu0 %v2633_v33 }
 0xb45   : > { %v1531_v12 = vpop.f32.mrb[4].mxu0 }
 0xb46   : > { %1536 = vrot.lane.b32.xlu1 %v1531_v12, %s2645_s14  ;;  %v2218_v13 = vpop.f32.mrb[5].mxu0  ;;  %s1867_s14 = scalar_lea.sflag [#allocation11], %s3183_s27 }
 0xbb8   : > { %v1537_v14 = vpop.permute.xlu1 %1536 }
 0xbb9   : > { %1540 = vst.msk [vmem:[#allocation8] sm:$0xff] %vm1539_vm9, %v1537_v14 }
 0xbc0   : > { %v1541_v15 = vld [vmem:[#allocation8] sm:$0xff] }
 0xbc1   : > { %2228 = vmatmul.mubr.msk.f32.vlgmr.msra.gmra.mrb[6].mxu0 %vm747_vm3, %v1541_v15 }
 0xbc2   : > { %2265 = vmatprep.mubr.msk.f32.mxu0 %vm2634_vm2, %v2635_v36  ;;  %v1657_v36 = vld [vmem:[#allocation5] sm:$0xff] }
 0xbc3   : > { %v2317_v28 = vpack.c.bf16 %v1658_v27, %v1657_v36 }
 0xbc5   : > { %2318 = vmatpush3.bf16.msra.mxu1 %v2317_v28 }
 0xbc6   : > { %2319 = vmatprep.subr.bf16.mxu1 %v2633_v33 }
 0xbc9   : > { %2321 = vmatpush3.bf16.msra.mxu1 %v2320_v31 }
 0xc94   : > { %v1622_v17 = vpop.f32.mrb[6].mxu0 }
 0xc95   : > { %v1623_v18 = vadd.f32 %v2062_v16, %v1622_v17  ;;  %v2229_v19 = vpop.f32.mrb[7].mxu0  ;;  %v2070_v16 = vld [vmem:[%s3178_s28] ss:$0 sm:$0xff]  ;;  %s2529_s28 = sshll.u32 %s2646_s30, 4  ;;  %s2530_s28 = int_to_ptr.vmem [resolvable:$false] %s2529_s28 }
 0xc96   : > { %s2531_s22 = scalar_lea.vmem %s2530_s28, 256  ;;  %p2532_p10 = scmp.lt.s32.totalorder %s3064_s29, %s2530_s28 }
 0xc97   : > { %v1626_v20 = vadd.f32 %v1623_v18, %v2820_v0  ;;  %v1742_v0 = vld [vmem:[#allocation6] sm:$0xff]  ;;  %p2533_p11 = scmp.lt.s32.totalorder %s2531_s22, %s2525_s18 }
 0xc98   : > { %v2323_v35 = vpack.c.bf16 %v1743_v32, %v1742_v0  ;;  %v2071_v18 = vld [vmem:[%s3179_s23] ss:$0 sm:$0xff] }
 0xc99   : > { %v1629_v21 = vsel %vm747_vm3, %v1626_v20, 0.0  ;;  %p2534_p12 = por %p2533_p11, %p2532_p10 }
 0xc9a   : > { %1630 = vadd.xlane.f32.xlu1 %v1629_v21  ;;  %2324 = vmatpush3.bf16.msra.mxu0 %v2323_v35 }
 0xc9b   : > { %2325 = vmatprep.subr.bf16.mxu0 %v2633_v33  ;;  %p2535_p13 = pnand %p2534_p12, %p2528_p9 }
 0xc9e   : > { %2327 = vmatpush3.bf16.msra.mxu0 %v2326_v38 }
 0xc9f   : > { %2328 = vmatprep.subr.bf16.mxu0 %v2633_v33 }
 0xca2   : > { %2330 = vmatpush3.bf16.msra.mxu0 %v2329_v42 }
 0xca3   : > { %2331 = vmatprep.subr.bf16.mxu0 %v2633_v33 }
 0xca6   : > { %2333 = vmatpush3.bf16.msra.mxu0 %v2332_v45 }
 0xca7   : > { %2334 = vmatprep.subr.bf16.mxu0 %v2633_v33 }
 0xcaa   : > { %2336 = vmatpush3.bf16.msra.mxu0 %v2335_v48 }
 0xcab   : > { %2337 = vmatprep.subr.bf16.mxu0 %v2633_v33  ;;  %v1753_v33 = vld [vmem:[#allocation6 + $0x58] sm:$0xff] }
 0xcac   : > { %v2338_v59 = vpack.c.bf16 %v1753_v33, %v1752_v58 }
 0xcae   : > { %2339 = vmatpush3.bf16.msra.mxu0 %v2338_v59 }
 0xd27   : > { %v1631_v22 = vpop.xlane.xlu1 %1630 }
 0xd28   : > { %v1633_v23 = vmul.f32 0.03125, %v1631_v22 }
 0xd2a   : > { %v1634_v24 = vsub.f32 %v1626_v20, %v1633_v23 }
 0xd2c   : > { %v1635_v25 = vmul.f32 %v1634_v24, %v1634_v24 }
 0xd2e   : > { %v1636_v26 = vsel %vm747_vm3, %v1635_v25, 0.0 }
 0xd2f   : > { %1637 = vadd.xlane.f32.xlu0 %v1636_v26 }
 0xdbc   : > { %v1638_v50 = vpop.xlane.xlu0 %1637 }
 0xdbd   : > { %v1639_v51 = vmul.f32 0.03125, %v1638_v50 }
 0xdbf   : > { %v1640_v52 = vadd.f32 1e-05, %v1639_v51 }
 0xdc1   : > { %2477 = vrsqrt.f32 %v1640_v52 }
 0xdcb   : > { %v2478_v53 = vpop.eup %2477 }
 0xdcc   : > { %v1642_v55 = vmul.f32 %v2478_v53, %v1634_v24 }
 0xdce   : > { %v1649_v41 = vmul.f32 %v2064_v54, %v1642_v55 }
 0xdd0   : > { %v1656_v57 = vadd.f32 %v2065_v56, %v1649_v41 }
 0xdd2   : > { %2239 = vmatmul.mubr.msk.f32.vlgmr.msra.gmra.mrb[12].mxu1 %vm747_vm3, %v1656_v57 }
 0xea5   : > { %v1737_v61 = vpop.f32.mrb[12].mxu1 }
 0xea6   : > { %v1738_v62 = vadd.f32 %v2066_v60, %v1737_v61  ;;  %v2240_v63 = vpop.f32.mrb[13].mxu1 }
 0xea8   : > { %v1741_v1 = vmax.f32 %v1738_v62, 0.0 }
 0xeaa   : > { %2266 = vmatmul.mubr.msk.f32.vlgmr.msra.gmra.mrb[8].mxu0 %vm1761_vm10, %v1741_v1 }
 0xf7d   : > { %v1831_v2 = vpop.f32.mrb[8].mxu0 }
 0xf7e   : > { %v1832_v3 = vadd.f32 %v2068_v49, %v1831_v2  ;;  %v2267_v4 = vpop.f32.mrb[9].mxu0 }
 0xf80   : > { %v1835_v5 = vadd.f32 %v1832_v3, %v1656_v57 }
 0xf82   : > { %v1838_v6 = vsel %vm747_vm3, %v1835_v5, 0.0 }
 0xf83   : > { %1839 = vadd.xlane.f32.xlu1 %v1838_v6 }
0x1010   : > { %v1840_v7 = vpop.xlane.xlu1 %1839 }
0x1011   : > { %v1841_v8 = vmul.f32 0.03125, %v1840_v7 }
0x1013   : > { %v1842_v9 = vsub.f32 %v1835_v5, %v1841_v8 }
0x1015   : > { %v1843_v10 = vmul.f32 %v1842_v9, %v1842_v9 }
0x1017   : > { %v1844_v11 = vsel %vm747_vm3, %v1843_v10, 0.0 }
0x1018   : > { %1845 = vadd.xlane.f32.xlu0 %v1844_v11 }
0x10a5   : > { %v1846_v12 = vpop.xlane.xlu0 %1845 }
0x10a6   : > { %v1847_v13 = vmul.f32 0.03125, %v1846_v12 }
0x10a8   : > { %v1848_v14 = vadd.f32 1e-05, %v1847_v13 }
0x10aa   : > { %2479 = vrsqrt.f32 %v1848_v14 }
0x10b4   : > { %v2480_v15 = vpop.eup %2479 }
0x10b5   : > { %v1850_v17 = vmul.f32 %v2480_v15, %v1842_v9 }
0x10b7   : > { %v1857_v19 = vmul.f32 %v2070_v16, %v1850_v17 }
0x10b9   : > { %v1864_v20 = vadd.f32 %v2071_v18, %v1857_v19 }
0x10bb   : > { %1865 = vst.msk [vmem:[%s3182_s24] sm:$0xff] %vm747_vm3, %v1864_v20 }
0x10bc   : > { %2538 = shalt.err (!%p2535_p13)
}
0x10bd   : > { %s2539_s26 = scalar_lea.hbm %s3062_s1, 128  ;;  %s2543_s23 = scalar_lea.hbm %s3181_s16, 512 }
0x10be   : > { %p2540_p0 = scmp.ne.s32.totalorder %s3062_s1, %s2539_s26  ;;  %p2544_p4 = scmp.lt.u32.totalorder %s3062_s1, %s3181_s16 }
0x10bf   : > { %p2545_p5 = scmp.lt.u32.totalorder %s2543_s23, %s2539_s26  ;;  %p2547_p7 = scmp.lt.u32.totalorder %s2539_s26, %s3062_s1 }
0x10c0   : > { %p2541_p1 = pnand %p2540_p0, %p2783_p3 }
0x10c1   : > { %p2546_p6 = por %p2545_p5, %p2544_p4 }
0x10c2   : > { %p2542_p2 = pneg %p2541_p1 }
0x10c3   : > { %p2548_p9 = por %p2547_p7, %p2546_p6 }
0x10c5   : > { %p2549_p10 = pnand %p2548_p9, %p2542_p2 }
0x10c7   : > { %2552 = shalt.err (!%p2549_p10)
}
0x10c8   : > { %2340 = dma.vmem_to_hbm [thread:$0]  (%p2783_p3), %s3064_s29, 128, %s3062_s1, %s1867_s14  }
0x10c9 PF: > { %s3184_s15 = sld [smem:[#allocation33_spill]]  ;;  %s3185_s21 = sld [smem:[#allocation27_spill]] }
0x10cf   : > { %p2346_p11 = scmp.ge.s32.totalorder %s3184_s15, 2  ;;  %s1894_s27 = sand.u32 1, %s3185_s21  }
0x10d0   : > { %s1895_s18 = scalar_lea.sflag [#allocation11], %s1894_s27 }
0x10d1   : > { %p2343_p12 = pnand %p2346_p11, %p2792_p8 }
0x10d3   : > { %2596 = dma.done.wait (!%p2343_p12), %s1895_s18, 128  }
0x10d4   : > { %2598 = vsyncadd (!%p2343_p12), %s1895_s18, 4294967168  ;;  %s29_s28 = sadd.s32 1, %s3184_s15   ;;  %s3187_s21 = sld [smem:[#allocation28_spill]] }
0x10d5   : > { %p26_p13 = scmp.ge.s32.totalorder %s29_s28, 6   ;;  %s3188_s22 = sld [smem:[#allocation29_spill]] }
0x10d6   : > { %s3189_s23 = sld [smem:[#allocation38_spill]]  ;;  %s3190_s24 = sld [smem:[#allocation31_spill]] }
0x10d7   : > { %s3191_s25 = sld [smem:[#allocation32_spill]]  ;;  %s3192_s26 = sld [smem:[#allocation34_spill]] }
0x10d8   : > { %s3193_s27 = sld [smem:[#allocation36_spill]]  ;;  %28 = sbr.rel (!%p26_p13) target bundleno = 11 (0xb), region = 248 }
0x10df   :  { %1900 = vsyncpa [#allocation11], 1 }
0x10e0   :  { %1902 = vsyncpa [#allocation11 + $0x1], 1 }
0x10e1   :  { %1903 = vsyncmov [#allocation9] }
0x10e4   :  { %s1904_s1 = vpop.sfrf %1903 }
0x10e5   :  { %p2077_p3 = scmp.ne.s32.totalorder %s1904_s1, 0 }
0x10e7   :  { %1908 = shalt.err (%p2077_p3)  }
0x10e8   :  { %1910 = vsyncmov [#allocation9 + $0x1] }
0x10eb   :  { %s1911_s0 = vpop.sfrf %1910 }
0x10ec   :  { %p2078_p8 = scmp.ne.s32.totalorder %s1911_s0, 0 }
0x10ee   :  { %1915 = shalt.err (%p2078_p8)  }
0x10ef   :  { %1917 = vsyncmov [#allocation9 + $0x2] }
0x10f2   :  { %s1918_s29 = vpop.sfrf %1917 }
0x10f3   :  { %p2079_p0 = scmp.ne.s32.totalorder %s1918_s29, 0 }
0x10f5   :  { %1922 = shalt.err (%p2079_p0)  }
0x10f6   :  { %1924 = vsyncmov [#allocation9 + $0x3] }
0x10f9   :  { %s1925_s14 = vpop.sfrf %1924 }
0x10fa   :  { %p2080_p1 = scmp.ne.s32.totalorder %s1925_s14, 0 }
0x10fc   :  { %1929 = shalt.err (%p2080_p1)  }
0x10fd   :  { %1931 = vsyncmov [#allocation9 + $0x4] }
0x1100   :  { %s1932_s30 = vpop.sfrf %1931 }
0x1101   :  { %p2081_p2 = scmp.ne.s32.totalorder %s1932_s30, 0 }
0x1103   :  { %1936 = shalt.err (%p2081_p2)  }

</bundles_post_ra>
